<compile_context>
chip_gen: v5e
topology: v5e:2x2
jax: 0.10.0
libtpu: 0.0.40
codegen_flags: <defaults>
</compile_context>

<pallas_src>
import jax
import jax.numpy as jnp
from jax.experimental import pallas as pl
from jax.experimental.pallas import tpu as pltpu

NUM_LAYERS = 13
LANE = 128
NEG_BIG = -1e30          # masks padded logit columns in the LogSoftmax


def _round_up(x, m):
    return (x + m - 1) // m * m


def _tree_sum(terms):
    """Balanced pairwise sum (avoids a serial accumulator chain on the VPU)."""
    terms = list(terms)
    while len(terms) > 1:
        nxt = [terms[i] + terms[i + 1] for i in range(0, len(terms) - 1, 2)]
        if len(terms) % 2:
            nxt.append(terms[-1])
        terms = nxt
    return terms[0]


def _make_kernel(num_layers, tb):
    """Two-phase kernel body. `tb` (batch tile) is static."""

    def kernel(lw_ref, ht_ref, meta_ref, wc_ref, wm_ref, bc_ref,
               out_ref, s_acc_ref, atten_ref, p_ref):
        phase = pl.program_id(0)
        tile = pl.program_id(1)
        off = pl.multiple_of(tile * tb, tb)

        # ---- phase 0, first tile: zero the global per-layer sum accumulator ----
        @pl.when(jnp.logical_and(phase == 0, tile == 0))
        def _init():
            s_acc_ref[...] = jnp.zeros_like(s_acc_ref)

        # ---- phase 0: stream ht once; MXU partials + global per-layer sums ----
        @pl.when(phase == 0)
        def _phase0():
            for l in range(num_layers):
                x = ht_ref[l].astype(jnp.float32)                 # (TB, H)
                # fc-folded per-layer partial (rides the otherwise-idle MXU
                # underneath the HBM-bound stream); ht is never re-read.
                p_ref[l, pl.ds(off, tb), :] = jnp.dot(
                    x, wc_ref[...], preferred_element_type=jnp.float32)
                # Per-row (1, H) accumulate: 13 tiny masked stores per tile are
                # fully hidden under the multi-us chunk DMA (kept over a single
                # full-block += to stay on proven lowering paths).
                s_acc_ref[pl.ds(l, 1), :] += jnp.sum(x, axis=0, keepdims=True)

        # ---- phase 1, first tile: finalize the batch-coupled layer softmax ----
        @pl.when(jnp.logical_and(phase == 1, tile == 0))
        def _finalize_atten():
            s = jnp.sum(s_acc_ref[...], axis=1, keepdims=True)     # (13, 1)
            logits = s * lw_ref[...]                               # (13, 1)
            m = jnp.max(logits, axis=(0, 1), keepdims=True)
            e = jnp.exp(logits - m)
            atten_ref[...] = e / jnp.sum(e, axis=(0, 1), keepdims=True)

        # ---- phase 1: attention-weighted folded partials + meta fc + LogSoftmax ----
        @pl.when(phase == 1)
        def _phase1():
            atten = atten_ref[...]                                 # loaded once, (13, 1)
            terms = [atten[l:l + 1, :] * p_ref[l, pl.ds(off, tb), :]
                     for l in range(num_layers)]                   # 13 x (TB, OP)
            out = (_tree_sum(terms)
                   + jnp.dot(meta_ref[...], wm_ref[...],
                             preferred_element_type=jnp.float32)
                   + bc_ref[...])                                  # (TB, OP)

            # LogSoftmax over dim 1; padded columns carry a -1e30 bias so they
            # never win the max and contribute exp(.) == 0 to the denominator.
            mo = jnp.max(out, axis=1, keepdims=True)
            z = out - mo
            lse = jnp.log(jnp.sum(jnp.exp(z), axis=1, keepdims=True))
            out_ref[...] = (z - lse).astype(out_ref.dtype)

    return kernel


def prepare_params(layer_weights, fc1_w, fc1_b, fc2_w, fc2_b, numeric_feature_size):
    """One-time weight re-layout (hoisted out of the per-call path).

    Folds fc1 and the dense half of fc2 (valid only because the eval-mode
    forward has no activation/dropout between them), splits fc2 across the
    concat, and pads the tiny output / meta-feature dims up to 128 lanes."""
    dense_size, hidden_size = fc1_w.shape
    output_size = fc2_w.shape[0]
    f = numeric_feature_size
    op = _round_up(output_size, LANE)
    fp = _round_up(f, LANE)
    f32 = jnp.float32
    hi = jax.lax.Precision.HIGHEST

    fc1_wt = fc1_w.T.astype(f32)                          # (H, D)
    fc2_wd = fc2_w[:, :dense_size].T.astype(f32)          # (D, O)
    fc2_wm = fc2_w[:, dense_size:].T.astype(f32)          # (F, O)

    wc = jnp.dot(fc1_wt, fc2_wd, precision=hi)            # (H, O) folded weight
    bc = (jnp.dot(fc1_b.astype(f32)[None, :], fc2_wd, precision=hi)
          + fc2_b.astype(f32)[None, :])                   # (1, O) folded bias

    wc_p = jnp.zeros((hidden_size, op), f32).at[:, :output_size].set(wc)
    wm_p = jnp.zeros((fp, op), f32).at[:f, :output_size].set(fc2_wm)
    bc_p = jnp.full((1, op), NEG_BIG, f32).at[:, :output_size].set(bc)

    return dict(
        layer_weights=layer_weights.astype(f32).reshape(NUM_LAYERS, 1),
        wc=wc_p, wm=wm_p, bc=bc_p,
        hidden_size=hidden_size, output_size=output_size,
        numeric_feature_size=f, op=op, fp=fp,
    )


def _vmem_capacity_bytes():
    """Per-core VMEM capacity from hardware; conservative 64 MiB fallback."""
    try:
        cap = int(pltpu.get_tpu_info().vmem_capacity_bytes)
        if cap > 0:
            return max(cap, 48 << 20)
    except Exception:
        pass
    return 64 << 20        # v7x-safe default


def bert_text_classifier(ht_cls, nn_input_meta, params, *, batch_tile=None):
    """ht_cls: (13, B, H) f32 or bf16; nn_input_meta: (B, F).  Returns (B, O) f32."""
    num_layers, batch, hidden = ht_cls.shape
    assert num_layers == NUM_LAYERS
    assert hidden == params["hidden_size"]
    op, fp = params["op"], params["fp"]

    itemsize = jnp.dtype(ht_cls.dtype).itemsize
    granule = 8 if itemsize >= 4 else 16           # sublane granule for ht dtype

    cap = _vmem_capacity_bytes()
    # Bigger streaming chunks on 128 MiB parts (v5e/v6e); smaller on v7x (64 MiB).
    target_chunk = (8 << 20) if cap >= (96 << 20) else (4 << 20)

    if batch_tile is None:
        batch_tile = max(1, target_chunk // (NUM_LAYERS * hidden * itemsize))
        batch_tile = min(1024, batch_tile)
    batch_tile = max(granule, (batch_tile // granule) * granule)

    def _layout(tile):
        if tile >= batch:
            return batch, batch, 1                 # single tile (full batch dim)
        pb = _round_up(batch, tile)
        return tile, pb, pb // tile

    def _vmem_needed(tile, pb):
        p_bytes = NUM_LAYERS * pb * op * 4                        # resident partials
        scratch = _round_up(NUM_LAYERS, 8) * (hidden + LANE) * 4  # s_acc + atten
        ht_stream = 2 * NUM_LAYERS * tile * hidden * itemsize     # double-buffered ht
        io_stream = 2 * tile * (fp + op) * 4                      # meta + out buffers
        weights = 2 * 4 * (hidden * op + fp * op + op + NUM_LAYERS)
        temps = 4 * tile * max(hidden, op) * 4                    # in-kernel temporaries
        return p_bytes + scratch + ht_stream + io_stream + weights + temps

    tb, padded_batch, num_tiles = _layout(batch_tile)
    budget = cap - (6 << 20)                       # headroom for compiler scratch/spills
    while _vmem_needed(tb, padded_batch) > budget and tb > granule:
        smaller = max(granule, ((tb // 2) // granule) * granule)
        if smaller == tb:
            break
        tb, padded_batch, num_tiles = _layout(smaller)
    # TODO(synk): extremely large batches would need a two-pass ht-streaming
    # fallback instead of VMEM-resident (13, B, 128) partials.
    assert _vmem_needed(tb, padded_batch) <= budget, (
        "batch too large for VMEM-resident per-layer partials")

    # ---- pad inputs: batch to a tile multiple, meta features to 128 lanes ----
    if padded_batch != batch:
        # zero rows contribute 0 to the global s sum -> semantics preserved
        ht_cls = jnp.pad(ht_cls, ((0, 0), (0, padded_batch - batch), (0, 0)))
    meta = jnp.zeros((padded_batch, fp), jnp.float32)
    meta = meta.at[:batch, :params["numeric_feature_size"]].set(
        nn_input_meta.astype(jnp.float32))

    # ht: phase 0 walks the batch tiles; phase 1 pins the last-loaded block so
    # the ht HBM stream is read exactly once per forward.
    ht_map = lambda p, i: (0, i * (1 - p) + (num_tiles - 1) * p, 0)
    in_specs = [
        pl.BlockSpec((NUM_LAYERS, 1), lambda p, i: (0, 0)),          # layer weights
        pl.BlockSpec((NUM_LAYERS, tb, hidden), ht_map),              # ht batch chunks
        pl.BlockSpec((tb, fp), lambda p, i: (i * p, 0)),             # meta (phase 1)
        pl.BlockSpec((hidden, op), lambda p, i: (0, 0)),             # folded fc weight Wc
        pl.BlockSpec((fp, op), lambda p, i: (0, 0)),                 # fc2 meta-half W^T
        pl.BlockSpec((1, op), lambda p, i: (0, 0)),                  # folded bias (pad=-1e30)
    ]
    out_spec = pl.BlockSpec((tb, op), lambda p, i: (i * p, 0))

    scratch = [
        pltpu.VMEM((NUM_LAYERS, hidden), jnp.float32),               # global per-layer sums
        pltpu.VMEM((NUM_LAYERS, 1), jnp.float32),                    # layer-attention weights
        pltpu.VMEM((NUM_LAYERS, padded_batch, op), jnp.float32),     # fc-folded partials P
    ]

    vmem_limit = int(min(cap - (2 << 20),
                         max(int(_vmem_needed(tb, padded_batch) * 1.3) + (4 << 20),
                             32 << 20)))

    kernel = _make_kernel(NUM_LAYERS, tb)

    out_padded = pl.pallas_call(
        kernel,
        out_shape=jax.ShapeDtypeStruct((padded_batch, op), jnp.float32),
        grid_spec=pltpu.PrefetchScalarGridSpec(
            num_scalar_prefetch=0,
            grid=(2, num_tiles),
            in_specs=in_specs,
            out_specs=out_spec,
            scratch_shapes=scratch),
        compiler_params=pltpu.CompilerParams(
            # TODO(synk): batch axis stays "arbitrary" (global-s reduction and the
            # phase-1/tile-0 softmax rely on sequential grid order); v7x dual-TC
            # needs a cross-core partial-s reduction or a two-call split.
            dimension_semantics=("arbitrary", "arbitrary"),
            vmem_limit_bytes=vmem_limit),
    )(params["layer_weights"], ht_cls, meta,
      params["wc"], params["wm"], params["bc"])

    return out_padded[:batch, :params["output_size"]]


def _reference(ht_cls, layer_weights, meta, fc1_w, fc1_b, fc2_w, fc2_b):
    # Pure-JAX mirror of the PyTorch forward (eval mode).
    with jax.default_matmul_precision("highest"):
        ht = ht_cls.astype(jnp.float32)
        s = jnp.sum(ht, axis=(1, 2))[:, None]                     # (13, 1)
        logits = (s * layer_weights).reshape(-1)                  # (13,)
        atten = jax.nn.softmax(logits, axis=0)
        feature = jnp.sum(ht * atten[:, None, None], axis=0)      # (B, H)
        dense = feature @ fc1_w.T + fc1_b
        concat = jnp.concatenate([dense, meta.astype(jnp.float32)], axis=1)
        out = concat @ fc2_w.T + fc2_b
        return jax.nn.log_softmax(out, axis=1)


if __name__ == "__main__":
    seq = 8
    hidden_size = 32              # stands in for BERT's 768
    dense_size = 16
    numeric_feature_size = 8
    output_size = 4

    key = jax.random.PRNGKey(0)
    k_w, k_f1w, k_f1b, k_f2w, k_f2b, k_data = jax.random.split(key, 6)

    # Deterministic parameter init (shapes from __init__).
    layer_weights = jax.random.uniform(k_w, (NUM_LAYERS, 1), dtype=jnp.float32)
    b1 = 1.0 / jnp.sqrt(hidden_size)
    fc1_w = jax.random.uniform(k_f1w, (dense_size, hidden_size),
                               minval=-b1, maxval=b1, dtype=jnp.float32)
    fc1_b = jax.random.uniform(k_f1b, (dense_size,),
                               minval=-b1, maxval=b1, dtype=jnp.float32)
    b2 = 1.0 / jnp.sqrt(dense_size + numeric_feature_size)
    fc2_w = jax.random.uniform(
        k_f2w, (output_size, dense_size + numeric_feature_size),
        minval=-b2, maxval=b2, dtype=jnp.float32)
    fc2_b = jax.random.uniform(k_f2b, (output_size,),
                               minval=-b2, maxval=b2, dtype=jnp.float32)

    # One-time weight re-layout / fc folding / lane padding.
    params = prepare_params(layer_weights, fc1_w, fc1_b, fc2_w, fc2_b,
                            numeric_feature_size)

    # (batch, tile override, ht dtype, atol)
    configs = [
        (2,  None, jnp.float32,  1e-5),   # single tile
        (20, 8,    jnp.float32,  1e-5),   # multi-tile + batch pad
        (32, 16,   jnp.bfloat16, 1e-4),   # multi-tile, bf16 HBM traffic
    ]
    for idx, (batch, tile, ht_dtype, atol) in enumerate(configs):
        kd, km = jax.random.split(jax.random.fold_in(k_data, idx))
        # Synthetic "all_hidden_states": 13 layers x (B, S, H); only CLS is used.
        all_hidden_states = jax.random.normal(
            kd, (NUM_LAYERS, batch, seq, hidden_size), dtype=jnp.float32)
        ht_cls = all_hidden_states[:, :, 0, :].astype(ht_dtype)     # (13, B, H)
        nn_input_meta = jax.random.normal(
            km, (batch, numeric_feature_size), dtype=jnp.float32)

        logps = bert_text_classifier(ht_cls, nn_input_meta, params,
                                     batch_tile=tile)
        logps = jax.block_until_ready(logps)

        ref = _reference(ht_cls, layer_weights, nn_input_meta,
                         fc1_w, fc1_b, fc2_w, fc2_b)
        assert logps.shape == (batch, output_size)
        assert jnp.allclose(logps, ref, atol=atol, rtol=1e-4), (
            f"config {idx}: max err {jnp.max(jnp.abs(logps - ref))}")

    print("KERNEL_OK")
</pallas_src>

<mosaic_0001>
module attributes {stable_mosaic.version = 11 : i64} {
  func.func @kernel(%arg0: i32, %arg1: i32, %arg2: memref<13x1xf32, #tpu.memory_space<vmem>>, %arg3: memref<13x2x32xf32, #tpu.memory_space<vmem>>, %arg4: memref<2x128xf32, #tpu.memory_space<vmem>>, %arg5: memref<32x128xf32, #tpu.memory_space<vmem>>, %arg6: memref<128x128xf32, #tpu.memory_space<vmem>>, %arg7: memref<1x128xf32, #tpu.memory_space<vmem>>, %arg8: memref<2x128xf32, #tpu.memory_space<vmem>>, %arg9: memref<13x32xf32, #tpu.memory_space<vmem>>, %arg10: memref<13x1xf32, #tpu.memory_space<vmem>>, %arg11: memref<13x2x128xf32, #tpu.memory_space<vmem>>) attributes {dimension_semantics = [#tpu.dimension_semantics<arbitrary>, #tpu.dimension_semantics<arbitrary>], iteration_bounds = array<i64: 2, 1>, scalar_prefetch = 0 : i64, scratch_operands = 3 : i64, tpu.core_type = #tpu.core_type<tc>, window_params = [{pipeline_mode = #tpu.pipeline_mode<synchronous>, transform_indices = @transform_0, window_bounds = array<i64: 13, 1>}, {transform_indices = @transform_1, window_bounds = array<i64: 13, 2, 32>}, {transform_indices = @transform_2, window_bounds = array<i64: 2, 128>}, {pipeline_mode = #tpu.pipeline_mode<synchronous>, transform_indices = @transform_3, window_bounds = array<i64: 32, 128>}, {pipeline_mode = #tpu.pipeline_mode<synchronous>, transform_indices = @transform_4, window_bounds = array<i64: 128, 128>}, {pipeline_mode = #tpu.pipeline_mode<synchronous>, transform_indices = @transform_5, window_bounds = array<i64: 1, 128>}, {transform_indices = @transform_6, window_bounds = array<i64: 2, 128>}]} {
    %c2_i32 = arith.constant 2 : i32
    %0 = arith.muli %arg1, %c2_i32 : i32
    %1 = tpu.assume_multiple %0, 2 : i32
    %c0_i32 = arith.constant 0 : i32
    %2 = arith.cmpi eq, %arg0, %c0_i32 : i32
    %c0_i32_0 = arith.constant 0 : i32
    %3 = arith.cmpi eq, %arg1, %c0_i32_0 : i32
    %4 = arith.andi %2, %3 : i1
    %5 = arith.extui %4 : i1 to i32
    %c0_i32_1 = arith.constant 0 : i32
    %6 = arith.cmpi ne, %5, %c0_i32_1 : i32
    scf.if %6 {
      %cst = arith.constant 0.000000e+00 : f32
      %18 = vector.broadcast %cst : f32 to vector<13x32xf32>
      %c0 = arith.constant 0 : index
      %c0_8 = arith.constant 0 : index
      %19 = vector.load %arg9[%c0, %c0_8] : memref<13x32xf32, #tpu.memory_space<vmem>>, vector<13x32xf32>
      tpu.vector_store %arg9[%c0, %c0_8], %18 {strides = array<i32>} : memref<13x32xf32, #tpu.memory_space<vmem>>, vector<13x32xf32>,
    } else {
    }
    %c0_i32_2 = arith.constant 0 : i32
    %7 = arith.cmpi eq, %arg0, %c0_i32_2 : i32
    %8 = arith.extui %7 : i1 to i32
    %c0_i32_3 = arith.constant 0 : i32
    %9 = arith.cmpi ne, %8, %c0_i32_3 : i32
    scf.if %9 {
      %c0 = arith.constant 0 : index
      %c0_8 = arith.constant 0 : index
      %c0_9 = arith.constant 0 : index
      %18 = vector.load %arg3[%c0, %c0_8, %c0_9] : memref<13x2x32xf32, #tpu.memory_space<vmem>>, vector<1x2x32xf32>
      %19 = vector.shape_cast %18 : vector<1x2x32xf32> to vector<2x32xf32>
      %c0_10 = arith.constant 0 : index
      %c0_11 = arith.constant 0 : index
      %20 = vector.load %arg5[%c0_10, %c0_11] : memref<32x128xf32, #tpu.memory_space<vmem>>, vector<32x128xf32>
      %cst = arith.constant dense<0.000000e+00> : vector<2x128xf32>
      %21 = tpu.matmul %19, %20, %cst {dimension_numbers = #tpu.dot_dimension_numbers<[1], [0], [0], [1], [0, 0, 1, 1], [], []>} : vector<2x32xf32>, vector<32x128xf32>, vector<2x128xf32> -> vector<2x128xf32>
      %c0_12 = arith.constant 0 : index
      %22 = arith.index_cast %1 : i32 to index
      %c0_13 = arith.constant 0 : index
      %23 = vector.load %arg11[%c0_12, %22, %c0_13] : memref<13x2x128xf32, #tpu.memory_space<vmem>>, vector<1x2x128xf32>
      %24 = vector.shape_cast %23 : vector<1x2x128xf32> to vector<2x128xf32>
      %25 = vector.shape_cast %21 : vector<2x128xf32> to vector<1x2x128xf32>
      tpu.vector_store %arg11[%c0_12, %22, %c0_13], %25 {strides = array<i32>} : memref<13x2x128xf32, #tpu.memory_space<vmem>>, vector<1x2x128xf32>,
      %c0_14 = arith.constant 0 : index
      %c0_15 = arith.constant 0 : index
      %26 = vector.load %arg9[%c0_14, %c0_15] : memref<13x32xf32, #tpu.memory_space<vmem>>, vector<1x32xf32>
      %cst_16 = arith.constant dense<0.000000e+00> : vector<32xf32>
      %27 = vector.multi_reduction <add>, %19, %cst_16 [0] : vector<2x32xf32> to vector<32xf32>
      %28 = vector.shape_cast %27 : vector<32xf32> to vector<1x32xf32>
      %29 = arith.addf %26, %28 : vector<1x32xf32>
      %c0_17 = arith.constant 0 : index
      %c0_18 = arith.constant 0 : index
      %30 = vector.load %arg9[%c0_17, %c0_18] : memref<13x32xf32, #tpu.memory_space<vmem>>, vector<1x32xf32>
      tpu.vector_store %arg9[%c0_17, %c0_18], %29 {strides = array<i32>} : memref<13x32xf32, #tpu.memory_space<vmem>>, vector<1x32xf32>,
      %c1 = arith.constant 1 : index
      %c0_19 = arith.constant 0 : index
      %c0_20 = arith.constant 0 : index
      %31 = vector.load %arg3[%c1, %c0_19, %c0_20] : memref<13x2x32xf32, #tpu.memory_space<vmem>>, vector<1x2x32xf32>
      %32 = vector.shape_cast %31 : vector<1x2x32xf32> to vector<2x32xf32>
      %c0_21 = arith.constant 0 : index
      %c0_22 = arith.constant 0 : index
      %33 = vector.load %arg5[%c0_21, %c0_22] : memref<32x128xf32, #tpu.memory_space<vmem>>, vector<32x128xf32>
      %cst_23 = arith.constant dense<0.000000e+00> : vector<2x128xf32>
      %34 = tpu.matmul %32, %33, %cst_23 {dimension_numbers = #tpu.dot_dimension_numbers<[1], [0], [0], [1], [0, 0, 1, 1], [], []>} : vector<2x32xf32>, vector<32x128xf32>, vector<2x128xf32> -> vector<2x128xf32>
      %c1_24 = arith.constant 1 : index
      %35 = arith.index_cast %1 : i32 to index
      %c0_25 = arith.constant 0 : index
      %36 = vector.load %arg11[%c1_24, %35, %c0_25] : memref<13x2x128xf32, #tpu.memory_space<vmem>>, vector<1x2x128xf32>
      %37 = vector.shape_cast %36 : vector<1x2x128xf32> to vector<2x128xf32>
      %38 = vector.shape_cast %34 : vector<2x128xf32> to vector<1x2x128xf32>
      tpu.vector_store %arg11[%c1_24, %35, %c0_25], %38 {strides = array<i32>} : memref<13x2x128xf32, #tpu.memory_space<vmem>>, vector<1x2x128xf32>,
      %c1_26 = arith.constant 1 : index
      %c0_27 = arith.constant 0 : index
      %39 = vector.load %arg9[%c1_26, %c0_27] : memref<13x32xf32, #tpu.memory_space<vmem>>, vector<1x32xf32>
      %cst_28 = arith.constant dense<0.000000e+00> : vector<32xf32>
      %40 = vector.multi_reduction <add>, %32, %cst_28 [0] : vector<2x32xf32> to vector<32xf32>
      %41 = vector.shape_cast %40 : vector<32xf32> to vector<1x32xf32>
      %42 = arith.addf %39, %41 : vector<1x32xf32>
      %c1_29 = arith.constant 1 : index
      %c0_30 = arith.constant 0 : index
      %43 = vector.load %arg9[%c1_29, %c0_30] : memref<13x32xf32, #tpu.memory_space<vmem>>, vector<1x32xf32>
      tpu.vector_store %arg9[%c1_29, %c0_30], %42 {strides = array<i32>} : memref<13x32xf32, #tpu.memory_space<vmem>>, vector<1x32xf32>,
      %c2 = arith.constant 2 : index
      %c0_31 = arith.constant 0 : index
      %c0_32 = arith.constant 0 : index
      %44 = vector.load %arg3[%c2, %c0_31, %c0_32] : memref<13x2x32xf32, #tpu.memory_space<vmem>>, vector<1x2x32xf32>
      %45 = vector.shape_cast %44 : vector<1x2x32xf32> to vector<2x32xf32>
      %c0_33 = arith.constant 0 : index
      %c0_34 = arith.constant 0 : index
      %46 = vector.load %arg5[%c0_33, %c0_34] : memref<32x128xf32, #tpu.memory_space<vmem>>, vector<32x128xf32>
      %cst_35 = arith.constant dense<0.000000e+00> : vector<2x128xf32>
      %47 = tpu.matmul %45, %46, %cst_35 {dimension_numbers = #tpu.dot_dimension_numbers<[1], [0], [0], [1], [0, 0, 1, 1], [], []>} : vector<2x32xf32>, vector<32x128xf32>, vector<2x128xf32> -> vector<2x128xf32>
      %c2_36 = arith.constant 2 : index
      %48 = arith.index_cast %1 : i32 to index
      %c0_37 = arith.constant 0 : index
      %49 = vector.load %arg11[%c2_36, %48, %c0_37] : memref<13x2x128xf32, #tpu.memory_space<vmem>>, vector<1x2x128xf32>
      %50 = vector.shape_cast %49 : vector<1x2x128xf32> to vector<2x128xf32>
      %51 = vector.shape_cast %47 : vector<2x128xf32> to vector<1x2x128xf32>
      tpu.vector_store %arg11[%c2_36, %48, %c0_37], %51 {strides = array<i32>} : memref<13x2x128xf32, #tpu.memory_space<vmem>>, vector<1x2x128xf32>,
      %c2_38 = arith.constant 2 : index
      %c0_39 = arith.constant 0 : index
      %52 = vector.load %arg9[%c2_38, %c0_39] : memref<13x32xf32, #tpu.memory_space<vmem>>, vector<1x32xf32>
      %cst_40 = arith.constant dense<0.000000e+00> : vector<32xf32>
      %53 = vector.multi_reduction <add>, %45, %cst_40 [0] : vector<2x32xf32> to vector<32xf32>
      %54 = vector.shape_cast %53 : vector<32xf32> to vector<1x32xf32>
      %55 = arith.addf %52, %54 : vector<1x32xf32>
      %c2_41 = arith.constant 2 : index
      %c0_42 = arith.constant 0 : index
      %56 = vector.load %arg9[%c2_41, %c0_42] : memref<13x32xf32, #tpu.memory_space<vmem>>, vector<1x32xf32>
      tpu.vector_store %arg9[%c2_41, %c0_42], %55 {strides = array<i32>} : memref<13x32xf32, #tpu.memory_space<vmem>>, vector<1x32xf32>,
      %c3 = arith.constant 3 : index
      %c0_43 = arith.constant 0 : index
      %c0_44 = arith.constant 0 : index
      %57 = vector.load %arg3[%c3, %c0_43, %c0_44] : memref<13x2x32xf32, #tpu.memory_space<vmem>>, vector<1x2x32xf32>
      %58 = vector.shape_cast %57 : vector<1x2x32xf32> to vector<2x32xf32>
      %c0_45 = arith.constant 0 : index
      %c0_46 = arith.constant 0 : index
      %59 = vector.load %arg5[%c0_45, %c0_46] : memref<32x128xf32, #tpu.memory_space<vmem>>, vector<32x128xf32>
      %cst_47 = arith.constant dense<0.000000e+00> : vector<2x128xf32>
      %60 = tpu.matmul %58, %59, %cst_47 {dimension_numbers = #tpu.dot_dimension_numbers<[1], [0], [0], [1], [0, 0, 1, 1], [], []>} : vector<2x32xf32>, vector<32x128xf32>, vector<2x128xf32> -> vector<2x128xf32>
      %c3_48 = arith.constant 3 : index
      %61 = arith.index_cast %1 : i32 to index
      %c0_49 = arith.constant 0 : index
      %62 = vector.load %arg11[%c3_48, %61, %c0_49] : memref<13x2x128xf32, #tpu.memory_space<vmem>>, vector<1x2x128xf32>
      %63 = vector.shape_cast %62 : vector<1x2x128xf32> to vector<2x128xf32>
      %64 = vector.shape_cast %60 : vector<2x128xf32> to vector<1x2x128xf32>
      tpu.vector_store %arg11[%c3_48, %61, %c0_49], %64 {strides = array<i32>} : memref<13x2x128xf32, #tpu.memory_space<vmem>>, vector<1x2x128xf32>,
      %c3_50 = arith.constant 3 : index
      %c0_51 = arith.constant 0 : index
      %65 = vector.load %arg9[%c3_50, %c0_51] : memref<13x32xf32, #tpu.memory_space<vmem>>, vector<1x32xf32>
      %cst_52 = arith.constant dense<0.000000e+00> : vector<32xf32>
      %66 = vector.multi_reduction <add>, %58, %cst_52 [0] : vector<2x32xf32> to vector<32xf32>
      %67 = vector.shape_cast %66 : vector<32xf32> to vector<1x32xf32>
      %68 = arith.addf %65, %67 : vector<1x32xf32>
      %c3_53 = arith.constant 3 : index
      %c0_54 = arith.constant 0 : index
      %69 = vector.load %arg9[%c3_53, %c0_54] : memref<13x32xf32, #tpu.memory_space<vmem>>, vector<1x32xf32>
      tpu.vector_store %arg9[%c3_53, %c0_54], %68 {strides = array<i32>} : memref<13x32xf32, #tpu.memory_space<vmem>>, vector<1x32xf32>,
      %c4 = arith.constant 4 : index
      %c0_55 = arith.constant 0 : index
      %c0_56 = arith.constant 0 : index
      %70 = vector.load %arg3[%c4, %c0_55, %c0_56] : memref<13x2x32xf32, #tpu.memory_space<vmem>>, vector<1x2x32xf32>
      %71 = vector.shape_cast %70 : vector<1x2x32xf32> to vector<2x32xf32>
      %c0_57 = arith.constant 0 : index
      %c0_58 = arith.constant 0 : index
      %72 = vector.load %arg5[%c0_57, %c0_58] : memref<32x128xf32, #tpu.memory_space<vmem>>, vector<32x128xf32>
      %cst_59 = arith.constant dense<0.000000e+00> : vector<2x128xf32>
      %73 = tpu.matmul %71, %72, %cst_59 {dimension_numbers = #tpu.dot_dimension_numbers<[1], [0], [0], [1], [0, 0, 1, 1], [], []>} : vector<2x32xf32>, vector<32x128xf32>, vector<2x128xf32> -> vector<2x128xf32>
      %c4_60 = arith.constant 4 : index
      %74 = arith.index_cast %1 : i32 to index
      %c0_61 = arith.constant 0 : index
      %75 = vector.load %arg11[%c4_60, %74, %c0_61] : memref<13x2x128xf32, #tpu.memory_space<vmem>>, vector<1x2x128xf32>
      %76 = vector.shape_cast %75 : vector<1x2x128xf32> to vector<2x128xf32>
      %77 = vector.shape_cast %73 : vector<2x128xf32> to vector<1x2x128xf32>
      tpu.vector_store %arg11[%c4_60, %74, %c0_61], %77 {strides = array<i32>} : memref<13x2x128xf32, #tpu.memory_space<vmem>>, vector<1x2x128xf32>,
      %c4_62 = arith.constant 4 : index
      %c0_63 = arith.constant 0 : index
      %78 = vector.load %arg9[%c4_62, %c0_63] : memref<13x32xf32, #tpu.memory_space<vmem>>, vector<1x32xf32>
      %cst_64 = arith.constant dense<0.000000e+00> : vector<32xf32>
      %79 = vector.multi_reduction <add>, %71, %cst_64 [0] : vector<2x32xf32> to vector<32xf32>
      %80 = vector.shape_cast %79 : vector<32xf32> to vector<1x32xf32>
      %81 = arith.addf %78, %80 : vector<1x32xf32>
      %c4_65 = arith.constant 4 : index
      %c0_66 = arith.constant 0 : index
      %82 = vector.load %arg9[%c4_65, %c0_66] : memref<13x32xf32, #tpu.memory_space<vmem>>, vector<1x32xf32>
      tpu.vector_store %arg9[%c4_65, %c0_66], %81 {strides = array<i32>} : memref<13x32xf32, #tpu.memory_space<vmem>>, vector<1x32xf32>,
      %c5 = arith.constant 5 : index
      %c0_67 = arith.constant 0 : index
      %c0_68 = arith.constant 0 : index
      %83 = vector.load %arg3[%c5, %c0_67, %c0_68] : memref<13x2x32xf32, #tpu.memory_space<vmem>>, vector<1x2x32xf32>
      %84 = vector.shape_cast %83 : vector<1x2x32xf32> to vector<2x32xf32>
      %c0_69 = arith.constant 0 : index
      %c0_70 = arith.constant 0 : index
      %85 = vector.load %arg5[%c0_69, %c0_70] : memref<32x128xf32, #tpu.memory_space<vmem>>, vector<32x128xf32>
      %cst_71 = arith.constant dense<0.000000e+00> : vector<2x128xf32>
      %86 = tpu.matmul %84, %85, %cst_71 {dimension_numbers = #tpu.dot_dimension_numbers<[1], [0], [0], [1], [0, 0, 1, 1], [], []>} : vector<2x32xf32>, vector<32x128xf32>, vector<2x128xf32> -> vector<2x128xf32>
      %c5_72 = arith.constant 5 : index
      %87 = arith.index_cast %1 : i32 to index
      %c0_73 = arith.constant 0 : index
      %88 = vector.load %arg11[%c5_72, %87, %c0_73] : memref<13x2x128xf32, #tpu.memory_space<vmem>>, vector<1x2x128xf32>
      %89 = vector.shape_cast %88 : vector<1x2x128xf32> to vector<2x128xf32>
      %90 = vector.shape_cast %86 : vector<2x128xf32> to vector<1x2x128xf32>
      tpu.vector_store %arg11[%c5_72, %87, %c0_73], %90 {strides = array<i32>} : memref<13x2x128xf32, #tpu.memory_space<vmem>>, vector<1x2x128xf32>,
      %c5_74 = arith.constant 5 : index
      %c0_75 = arith.constant 0 : index
      %91 = vector.load %arg9[%c5_74, %c0_75] : memref<13x32xf32, #tpu.memory_space<vmem>>, vector<1x32xf32>
      %cst_76 = arith.constant dense<0.000000e+00> : vector<32xf32>
      %92 = vector.multi_reduction <add>, %84, %cst_76 [0] : vector<2x32xf32> to vector<32xf32>
      %93 = vector.shape_cast %92 : vector<32xf32> to vector<1x32xf32>
      %94 = arith.addf %91, %93 : vector<1x32xf32>
      %c5_77 = arith.constant 5 : index
      %c0_78 = arith.constant 0 : index
      %95 = vector.load %arg9[%c5_77, %c0_78] : memref<13x32xf32, #tpu.memory_space<vmem>>, vector<1x32xf32>
      tpu.vector_store %arg9[%c5_77, %c0_78], %94 {strides = array<i32>} : memref<13x32xf32, #tpu.memory_space<vmem>>, vector<1x32xf32>,
      %c6 = arith.constant 6 : index
      %c0_79 = arith.constant 0 : index
      %c0_80 = arith.constant 0 : index
      %96 = vector.load %arg3[%c6, %c0_79, %c0_80] : memref<13x2x32xf32, #tpu.memory_space<vmem>>, vector<1x2x32xf32>
      %97 = vector.shape_cast %96 : vector<1x2x32xf32> to vector<2x32xf32>
      %c0_81 = arith.constant 0 : index
      %c0_82 = arith.constant 0 : index
      %98 = vector.load %arg5[%c0_81, %c0_82] : memref<32x128xf32, #tpu.memory_space<vmem>>, vector<32x128xf32>
      %cst_83 = arith.constant dense<0.000000e+00> : vector<2x128xf32>
      %99 = tpu.matmul %97, %98, %cst_83 {dimension_numbers = #tpu.dot_dimension_numbers<[1], [0], [0], [1], [0, 0, 1, 1], [], []>} : vector<2x32xf32>, vector<32x128xf32>, vector<2x128xf32> -> vector<2x128xf32>
      %c6_84 = arith.constant 6 : index
      %100 = arith.index_cast %1 : i32 to index
      %c0_85 = arith.constant 0 : index
      %101 = vector.load %arg11[%c6_84, %100, %c0_85] : memref<13x2x128xf32, #tpu.memory_space<vmem>>, vector<1x2x128xf32>
      %102 = vector.shape_cast %101 : vector<1x2x128xf32> to vector<2x128xf32>
      %103 = vector.shape_cast %99 : vector<2x128xf32> to vector<1x2x128xf32>
      tpu.vector_store %arg11[%c6_84, %100, %c0_85], %103 {strides = array<i32>} : memref<13x2x128xf32, #tpu.memory_space<vmem>>, vector<1x2x128xf32>,
      %c6_86 = arith.constant 6 : index
      %c0_87 = arith.constant 0 : index
      %104 = vector.load %arg9[%c6_86, %c0_87] : memref<13x32xf32, #tpu.memory_space<vmem>>, vector<1x32xf32>
      %cst_88 = arith.constant dense<0.000000e+00> : vector<32xf32>
      %105 = vector.multi_reduction <add>, %97, %cst_88 [0] : vector<2x32xf32> to vector<32xf32>
      %106 = vector.shape_cast %105 : vector<32xf32> to vector<1x32xf32>
      %107 = arith.addf %104, %106 : vector<1x32xf32>
      %c6_89 = arith.constant 6 : index
      %c0_90 = arith.constant 0 : index
      %108 = vector.load %arg9[%c6_89, %c0_90] : memref<13x32xf32, #tpu.memory_space<vmem>>, vector<1x32xf32>
      tpu.vector_store %arg9[%c6_89, %c0_90], %107 {strides = array<i32>} : memref<13x32xf32, #tpu.memory_space<vmem>>, vector<1x32xf32>,
      %c7 = arith.constant 7 : index
      %c0_91 = arith.constant 0 : index
      %c0_92 = arith.constant 0 : index
      %109 = vector.load %arg3[%c7, %c0_91, %c0_92] : memref<13x2x32xf32, #tpu.memory_space<vmem>>, vector<1x2x32xf32>
      %110 = vector.shape_cast %109 : vector<1x2x32xf32> to vector<2x32xf32>
      %c0_93 = arith.constant 0 : index
      %c0_94 = arith.constant 0 : index
      %111 = vector.load %arg5[%c0_93, %c0_94] : memref<32x128xf32, #tpu.memory_space<vmem>>, vector<32x128xf32>
      %cst_95 = arith.constant dense<0.000000e+00> : vector<2x128xf32>
      %112 = tpu.matmul %110, %111, %cst_95 {dimension_numbers = #tpu.dot_dimension_numbers<[1], [0], [0], [1], [0, 0, 1, 1], [], []>} : vector<2x32xf32>, vector<32x128xf32>, vector<2x128xf32> -> vector<2x128xf32>
      %c7_96 = arith.constant 7 : index
      %113 = arith.index_cast %1 : i32 to index
      %c0_97 = arith.constant 0 : index
      %114 = vector.load %arg11[%c7_96, %113, %c0_97] : memref<13x2x128xf32, #tpu.memory_space<vmem>>, vector<1x2x128xf32>
      %115 = vector.shape_cast %114 : vector<1x2x128xf32> to vector<2x128xf32>
      %116 = vector.shape_cast %112 : vector<2x128xf32> to vector<1x2x128xf32>
      tpu.vector_store %arg11[%c7_96, %113, %c0_97], %116 {strides = array<i32>} : memref<13x2x128xf32, #tpu.memory_space<vmem>>, vector<1x2x128xf32>,
      %c7_98 = arith.constant 7 : index
      %c0_99 = arith.constant 0 : index
      %117 = vector.load %arg9[%c7_98, %c0_99] : memref<13x32xf32, #tpu.memory_space<vmem>>, vector<1x32xf32>
      %cst_100 = arith.constant dense<0.000000e+00> : vector<32xf32>
      %118 = vector.multi_reduction <add>, %110, %cst_100 [0] : vector<2x32xf32> to vector<32xf32>
      %119 = vector.shape_cast %118 : vector<32xf32> to vector<1x32xf32>
      %120 = arith.addf %117, %119 : vector<1x32xf32>
      %c7_101 = arith.constant 7 : index
      %c0_102 = arith.constant 0 : index
      %121 = vector.load %arg9[%c7_101, %c0_102] : memref<13x32xf32, #tpu.memory_space<vmem>>, vector<1x32xf32>
      tpu.vector_store %arg9[%c7_101, %c0_102], %120 {strides = array<i32>} : memref<13x32xf32, #tpu.memory_space<vmem>>, vector<1x32xf32>,
      %c8 = arith.constant 8 : index
      %c0_103 = arith.constant 0 : index
      %c0_104 = arith.constant 0 : index
      %122 = vector.load %arg3[%c8, %c0_103, %c0_104] : memref<13x2x32xf32, #tpu.memory_space<vmem>>, vector<1x2x32xf32>
      %123 = vector.shape_cast %122 : vector<1x2x32xf32> to vector<2x32xf32>
      %c0_105 = arith.constant 0 : index
      %c0_106 = arith.constant 0 : index
      %124 = vector.load %arg5[%c0_105, %c0_106] : memref<32x128xf32, #tpu.memory_space<vmem>>, vector<32x128xf32>
      %cst_107 = arith.constant dense<0.000000e+00> : vector<2x128xf32>
      %125 = tpu.matmul %123, %124, %cst_107 {dimension_numbers = #tpu.dot_dimension_numbers<[1], [0], [0], [1], [0, 0, 1, 1], [], []>} : vector<2x32xf32>, vector<32x128xf32>, vector<2x128xf32> -> vector<2x128xf32>
      %c8_108 = arith.constant 8 : index
      %126 = arith.index_cast %1 : i32 to index
      %c0_109 = arith.constant 0 : index
      %127 = vector.load %arg11[%c8_108, %126, %c0_109] : memref<13x2x128xf32, #tpu.memory_space<vmem>>, vector<1x2x128xf32>
      %128 = vector.shape_cast %127 : vector<1x2x128xf32> to vector<2x128xf32>
      %129 = vector.shape_cast %125 : vector<2x128xf32> to vector<1x2x128xf32>
      tpu.vector_store %arg11[%c8_108, %126, %c0_109], %129 {strides = array<i32>} : memref<13x2x128xf32, #tpu.memory_space<vmem>>, vector<1x2x128xf32>,
      %c8_110 = arith.constant 8 : index
      %c0_111 = arith.constant 0 : index
      %130 = vector.load %arg9[%c8_110, %c0_111] : memref<13x32xf32, #tpu.memory_space<vmem>>, vector<1x32xf32>
      %cst_112 = arith.constant dense<0.000000e+00> : vector<32xf32>
      %131 = vector.multi_reduction <add>, %123, %cst_112 [0] : vector<2x32xf32> to vector<32xf32>
      %132 = vector.shape_cast %131 : vector<32xf32> to vector<1x32xf32>
      %133 = arith.addf %130, %132 : vector<1x32xf32>
      %c8_113 = arith.constant 8 : index
      %c0_114 = arith.constant 0 : index
      %134 = vector.load %arg9[%c8_113, %c0_114] : memref<13x32xf32, #tpu.memory_space<vmem>>, vector<1x32xf32>
      tpu.vector_store %arg9[%c8_113, %c0_114], %133 {strides = array<i32>} : memref<13x32xf32, #tpu.memory_space<vmem>>, vector<1x32xf32>,
      %c9 = arith.constant 9 : index
      %c0_115 = arith.constant 0 : index
      %c0_116 = arith.constant 0 : index
      %135 = vector.load %arg3[%c9, %c0_115, %c0_116] : memref<13x2x32xf32, #tpu.memory_space<vmem>>, vector<1x2x32xf32>
      %136 = vector.shape_cast %135 : vector<1x2x32xf32> to vector<2x32xf32>
      %c0_117 = arith.constant 0 : index
      %c0_118 = arith.constant 0 : index
      %137 = vector.load %arg5[%c0_117, %c0_118] : memref<32x128xf32, #tpu.memory_space<vmem>>, vector<32x128xf32>
      %cst_119 = arith.constant dense<0.000000e+00> : vector<2x128xf32>
      %138 = tpu.matmul %136, %137, %cst_119 {dimension_numbers = #tpu.dot_dimension_numbers<[1], [0], [0], [1], [0, 0, 1, 1], [], []>} : vector<2x32xf32>, vector<32x128xf32>, vector<2x128xf32> -> vector<2x128xf32>
      %c9_120 = arith.constant 9 : index
      %139 = arith.index_cast %1 : i32 to index
      %c0_121 = arith.constant 0 : index
      %140 = vector.load %arg11[%c9_120, %139, %c0_121] : memref<13x2x128xf32, #tpu.memory_space<vmem>>, vector<1x2x128xf32>
      %141 = vector.shape_cast %140 : vector<1x2x128xf32> to vector<2x128xf32>
      %142 = vector.shape_cast %138 : vector<2x128xf32> to vector<1x2x128xf32>
      tpu.vector_store %arg11[%c9_120, %139, %c0_121], %142 {strides = array<i32>} : memref<13x2x128xf32, #tpu.memory_space<vmem>>, vector<1x2x128xf32>,
      %c9_122 = arith.constant 9 : index
      %c0_123 = arith.constant 0 : index
      %143 = vector.load %arg9[%c9_122, %c0_123] : memref<13x32xf32, #tpu.memory_space<vmem>>, vector<1x32xf32>
      %cst_124 = arith.constant dense<0.000000e+00> : vector<32xf32>
      %144 = vector.multi_reduction <add>, %136, %cst_124 [0] : vector<2x32xf32> to vector<32xf32>
      %145 = vector.shape_cast %144 : vector<32xf32> to vector<1x32xf32>
      %146 = arith.addf %143, %145 : vector<1x32xf32>
      %c9_125 = arith.constant 9 : index
      %c0_126 = arith.constant 0 : index
      %147 = vector.load %arg9[%c9_125, %c0_126] : memref<13x32xf32, #tpu.memory_space<vmem>>, vector<1x32xf32>
      tpu.vector_store %arg9[%c9_125, %c0_126], %146 {strides = array<i32>} : memref<13x32xf32, #tpu.memory_space<vmem>>, vector<1x32xf32>,
      %c10 = arith.constant 10 : index
      %c0_127 = arith.constant 0 : index
      %c0_128 = arith.constant 0 : index
      %148 = vector.load %arg3[%c10, %c0_127, %c0_128] : memref<13x2x32xf32, #tpu.memory_space<vmem>>, vector<1x2x32xf32>
      %149 = vector.shape_cast %148 : vector<1x2x32xf32> to vector<2x32xf32>
      %c0_129 = arith.constant 0 : index
      %c0_130 = arith.constant 0 : index
      %150 = vector.load %arg5[%c0_129, %c0_130] : memref<32x128xf32, #tpu.memory_space<vmem>>, vector<32x128xf32>
      %cst_131 = arith.constant dense<0.000000e+00> : vector<2x128xf32>
      %151 = tpu.matmul %149, %150, %cst_131 {dimension_numbers = #tpu.dot_dimension_numbers<[1], [0], [0], [1], [0, 0, 1, 1], [], []>} : vector<2x32xf32>, vector<32x128xf32>, vector<2x128xf32> -> vector<2x128xf32>
      %c10_132 = arith.constant 10 : index
      %152 = arith.index_cast %1 : i32 to index
      %c0_133 = arith.constant 0 : index
      %153 = vector.load %arg11[%c10_132, %152, %c0_133] : memref<13x2x128xf32, #tpu.memory_space<vmem>>, vector<1x2x128xf32>
      %154 = vector.shape_cast %153 : vector<1x2x128xf32> to vector<2x128xf32>
      %155 = vector.shape_cast %151 : vector<2x128xf32> to vector<1x2x128xf32>
      tpu.vector_store %arg11[%c10_132, %152, %c0_133], %155 {strides = array<i32>} : memref<13x2x128xf32, #tpu.memory_space<vmem>>, vector<1x2x128xf32>,
      %c10_134 = arith.constant 10 : index
      %c0_135 = arith.constant 0 : index
      %156 = vector.load %arg9[%c10_134, %c0_135] : memref<13x32xf32, #tpu.memory_space<vmem>>, vector<1x32xf32>
      %cst_136 = arith.constant dense<0.000000e+00> : vector<32xf32>
      %157 = vector.multi_reduction <add>, %149, %cst_136 [0] : vector<2x32xf32> to vector<32xf32>
      %158 = vector.shape_cast %157 : vector<32xf32> to vector<1x32xf32>
      %159 = arith.addf %156, %158 : vector<1x32xf32>
      %c10_137 = arith.constant 10 : index
      %c0_138 = arith.constant 0 : index
      %160 = vector.load %arg9[%c10_137, %c0_138] : memref<13x32xf32, #tpu.memory_space<vmem>>, vector<1x32xf32>
      tpu.vector_store %arg9[%c10_137, %c0_138], %159 {strides = array<i32>} : memref<13x32xf32, #tpu.memory_space<vmem>>, vector<1x32xf32>,
      %c11 = arith.constant 11 : index
      %c0_139 = arith.constant 0 : index
      %c0_140 = arith.constant 0 : index
      %161 = vector.load %arg3[%c11, %c0_139, %c0_140] : memref<13x2x32xf32, #tpu.memory_space<vmem>>, vector<1x2x32xf32>
      %162 = vector.shape_cast %161 : vector<1x2x32xf32> to vector<2x32xf32>
      %c0_141 = arith.constant 0 : index
      %c0_142 = arith.constant 0 : index
      %163 = vector.load %arg5[%c0_141, %c0_142] : memref<32x128xf32, #tpu.memory_space<vmem>>, vector<32x128xf32>
      %cst_143 = arith.constant dense<0.000000e+00> : vector<2x128xf32>
      %164 = tpu.matmul %162, %163, %cst_143 {dimension_numbers = #tpu.dot_dimension_numbers<[1], [0], [0], [1], [0, 0, 1, 1], [], []>} : vector<2x32xf32>, vector<32x128xf32>, vector<2x128xf32> -> vector<2x128xf32>
      %c11_144 = arith.constant 11 : index
      %165 = arith.index_cast %1 : i32 to index
      %c0_145 = arith.constant 0 : index
      %166 = vector.load %arg11[%c11_144, %165, %c0_145] : memref<13x2x128xf32, #tpu.memory_space<vmem>>, vector<1x2x128xf32>
      %167 = vector.shape_cast %166 : vector<1x2x128xf32> to vector<2x128xf32>
      %168 = vector.shape_cast %164 : vector<2x128xf32> to vector<1x2x128xf32>
      tpu.vector_store %arg11[%c11_144, %165, %c0_145], %168 {strides = array<i32>} : memref<13x2x128xf32, #tpu.memory_space<vmem>>, vector<1x2x128xf32>,
      %c11_146 = arith.constant 11 : index
      %c0_147 = arith.constant 0 : index
      %169 = vector.load %arg9[%c11_146, %c0_147] : memref<13x32xf32, #tpu.memory_space<vmem>>, vector<1x32xf32>
      %cst_148 = arith.constant dense<0.000000e+00> : vector<32xf32>
      %170 = vector.multi_reduction <add>, %162, %cst_148 [0] : vector<2x32xf32> to vector<32xf32>
      %171 = vector.shape_cast %170 : vector<32xf32> to vector<1x32xf32>
      %172 = arith.addf %169, %171 : vector<1x32xf32>
      %c11_149 = arith.constant 11 : index
      %c0_150 = arith.constant 0 : index
      %173 = vector.load %arg9[%c11_149, %c0_150] : memref<13x32xf32, #tpu.memory_space<vmem>>, vector<1x32xf32>
      tpu.vector_store %arg9[%c11_149, %c0_150], %172 {strides = array<i32>} : memref<13x32xf32, #tpu.memory_space<vmem>>, vector<1x32xf32>,
      %c12 = arith.constant 12 : index
      %c0_151 = arith.constant 0 : index
      %c0_152 = arith.constant 0 : index
      %174 = vector.load %arg3[%c12, %c0_151, %c0_152] : memref<13x2x32xf32, #tpu.memory_space<vmem>>, vector<1x2x32xf32>
      %175 = vector.shape_cast %174 : vector<1x2x32xf32> to vector<2x32xf32>
      %c0_153 = arith.constant 0 : index
      %c0_154 = arith.constant 0 : index
      %176 = vector.load %arg5[%c0_153, %c0_154] : memref<32x128xf32, #tpu.memory_space<vmem>>, vector<32x128xf32>
      %cst_155 = arith.constant dense<0.000000e+00> : vector<2x128xf32>
      %177 = tpu.matmul %175, %176, %cst_155 {dimension_numbers = #tpu.dot_dimension_numbers<[1], [0], [0], [1], [0, 0, 1, 1], [], []>} : vector<2x32xf32>, vector<32x128xf32>, vector<2x128xf32> -> vector<2x128xf32>
      %c12_156 = arith.constant 12 : index
      %178 = arith.index_cast %1 : i32 to index
      %c0_157 = arith.constant 0 : index
      %179 = vector.load %arg11[%c12_156, %178, %c0_157] : memref<13x2x128xf32, #tpu.memory_space<vmem>>, vector<1x2x128xf32>
      %180 = vector.shape_cast %179 : vector<1x2x128xf32> to vector<2x128xf32>
      %181 = vector.shape_cast %177 : vector<2x128xf32> to vector<1x2x128xf32>
      tpu.vector_store %arg11[%c12_156, %178, %c0_157], %181 {strides = array<i32>} : memref<13x2x128xf32, #tpu.memory_space<vmem>>, vector<1x2x128xf32>,
      %c12_158 = arith.constant 12 : index
      %c0_159 = arith.constant 0 : index
      %182 = vector.load %arg9[%c12_158, %c0_159] : memref<13x32xf32, #tpu.memory_space<vmem>>, vector<1x32xf32>
      %cst_160 = arith.constant dense<0.000000e+00> : vector<32xf32>
      %183 = vector.multi_reduction <add>, %175, %cst_160 [0] : vector<2x32xf32> to vector<32xf32>
      %184 = vector.shape_cast %183 : vector<32xf32> to vector<1x32xf32>
      %185 = arith.addf %182, %184 : vector<1x32xf32>
      %c12_161 = arith.constant 12 : index
      %c0_162 = arith.constant 0 : index
      %186 = vector.load %arg9[%c12_161, %c0_162] : memref<13x32xf32, #tpu.memory_space<vmem>>, vector<1x32xf32>
      tpu.vector_store %arg9[%c12_161, %c0_162], %185 {strides = array<i32>} : memref<13x32xf32, #tpu.memory_space<vmem>>, vector<1x32xf32>,
    } else {
    }
    %c1_i32 = arith.constant 1 : i32
    %10 = arith.cmpi eq, %arg0, %c1_i32 : i32
    %c0_i32_4 = arith.constant 0 : i32
    %11 = arith.cmpi eq, %arg1, %c0_i32_4 : i32
    %12 = arith.andi %10, %11 : i1
    %13 = arith.extui %12 : i1 to i32
    %c0_i32_5 = arith.constant 0 : i32
    %14 = arith.cmpi ne, %13, %c0_i32_5 : i32
    scf.if %14 {
      %c0 = arith.constant 0 : index
      %c0_8 = arith.constant 0 : index
      %18 = vector.load %arg9[%c0, %c0_8] : memref<13x32xf32, #tpu.memory_space<vmem>>, vector<13x32xf32>
      %cst = arith.constant dense<0.000000e+00> : vector<13xf32>
      %19 = vector.multi_reduction <add>, %18, %cst [1] : vector<13x32xf32> to vector<13xf32>
      %20 = vector.shape_cast %19 : vector<13xf32> to vector<13x1xf32>
      %c0_9 = arith.constant 0 : index
      %c0_10 = arith.constant 0 : index
      %21 = vector.load %arg2[%c0_9, %c0_10] : memref<13x1xf32, #tpu.memory_space<vmem>>, vector<13x1xf32>
      %22 = arith.mulf %20, %21 : vector<13x1xf32>
      %23 = vector.shape_cast %22 : vector<13x1xf32> to vector<1x13x1xf32>
      %cst_11 = arith.constant dense<0xFF800000> : vector<1xf32>
      %24 = vector.multi_reduction <maximumf>, %23, %cst_11 [1, 2] : vector<1x13x1xf32> to vector<1xf32>
      %25 = vector.shape_cast %24 : vector<1xf32> to vector<1x1x1xf32>
      %26 = vector.extract %25[0, 0, 0] : f32 from vector<1x1x1xf32>
      %27 = vector.broadcast %26 : f32 to vector<1x1xf32>
      %28 = vector.broadcast %27 : vector<1x1xf32> to vector<13x1xf32>
      %29 = arith.subf %22, %28 : vector<13x1xf32>
      %30 = math.exp %29 : vector<13x1xf32>
      %31 = vector.shape_cast %30 : vector<13x1xf32> to vector<1x13x1xf32>
      %cst_12 = arith.constant dense<0.000000e+00> : vector<1xf32>
      %32 = vector.multi_reduction <add>, %31, %cst_12 [1, 2] : vector<1x13x1xf32> to vector<1xf32>
      %33 = vector.shape_cast %32 : vector<1xf32> to vector<1x1x1xf32>
      %34 = vector.extract %33[0, 0, 0] : f32 from vector<1x1x1xf32>
      %35 = vector.broadcast %34 : f32 to vector<1x1xf32>
      %36 = vector.broadcast %35 : vector<1x1xf32> to vector<13x1xf32>
      %37 = arith.divf %30, %36 : vector<13x1xf32>
      %c0_13 = arith.constant 0 : index
      %c0_14 = arith.constant 0 : index
      %38 = vector.load %arg10[%c0_13, %c0_14] : memref<13x1xf32, #tpu.memory_space<vmem>>, vector<13x1xf32>
      tpu.vector_store %arg10[%c0_13, %c0_14], %37 {strides = array<i32>} : memref<13x1xf32, #tpu.memory_space<vmem>>, vector<13x1xf32>,
    } else {
    }
    %c1_i32_6 = arith.constant 1 : i32
    %15 = arith.cmpi eq, %arg0, %c1_i32_6 : i32
    %16 = arith.extui %15 : i1 to i32
    %c0_i32_7 = arith.constant 0 : i32
    %17 = arith.cmpi ne, %16, %c0_i32_7 : i32
    scf.if %17 {
      %c0 = arith.constant 0 : index
      %c0_8 = arith.constant 0 : index
      %18 = vector.load %arg10[%c0, %c0_8] : memref<13x1xf32, #tpu.memory_space<vmem>>, vector<13x1xf32>
      %19 = vector.extract_strided_slice %18 {offsets = [0, 0], sizes = [1, 1], strides = [1, 1]} : vector<13x1xf32> to vector<1x1xf32>
      %c0_9 = arith.constant 0 : index
      %20 = arith.index_cast %1 : i32 to index
      %c0_10 = arith.constant 0 : index
      %21 = vector.load %arg11[%c0_9, %20, %c0_10] : memref<13x2x128xf32, #tpu.memory_space<vmem>>, vector<1x2x128xf32>
      %22 = vector.shape_cast %21 : vector<1x2x128xf32> to vector<2x128xf32>
      %23 = vector.broadcast %19 : vector<1x1xf32> to vector<2x128xf32>
      %24 = arith.mulf %23, %22 : vector<2x128xf32>
      %25 = vector.extract_strided_slice %18 {offsets = [1, 0], sizes = [1, 1], strides = [1, 1]} : vector<13x1xf32> to vector<1x1xf32>
      %c1 = arith.constant 1 : index
      %26 = arith.index_cast %1 : i32 to index
      %c0_11 = arith.constant 0 : index
      %27 = vector.load %arg11[%c1, %26, %c0_11] : memref<13x2x128xf32, #tpu.memory_space<vmem>>, vector<1x2x128xf32>
      %28 = vector.shape_cast %27 : vector<1x2x128xf32> to vector<2x128xf32>
      %29 = vector.broadcast %25 : vector<1x1xf32> to vector<2x128xf32>
      %30 = arith.mulf %29, %28 : vector<2x128xf32>
      %31 = vector.extract_strided_slice %18 {offsets = [2, 0], sizes = [1, 1], strides = [1, 1]} : vector<13x1xf32> to vector<1x1xf32>
      %c2 = arith.constant 2 : index
      %32 = arith.index_cast %1 : i32 to index
      %c0_12 = arith.constant 0 : index
      %33 = vector.load %arg11[%c2, %32, %c0_12] : memref<13x2x128xf32, #tpu.memory_space<vmem>>, vector<1x2x128xf32>
      %34 = vector.shape_cast %33 : vector<1x2x128xf32> to vector<2x128xf32>
      %35 = vector.broadcast %31 : vector<1x1xf32> to vector<2x128xf32>
      %36 = arith.mulf %35, %34 : vector<2x128xf32>
      %37 = vector.extract_strided_slice %18 {offsets = [3, 0], sizes = [1, 1], strides = [1, 1]} : vector<13x1xf32> to vector<1x1xf32>
      %c3 = arith.constant 3 : index
      %38 = arith.index_cast %1 : i32 to index
      %c0_13 = arith.constant 0 : index
      %39 = vector.load %arg11[%c3, %38, %c0_13] : memref<13x2x128xf32, #tpu.memory_space<vmem>>, vector<1x2x128xf32>
      %40 = vector.shape_cast %39 : vector<1x2x128xf32> to vector<2x128xf32>
      %41 = vector.broadcast %37 : vector<1x1xf32> to vector<2x128xf32>
      %42 = arith.mulf %41, %40 : vector<2x128xf32>
      %43 = vector.extract_strided_slice %18 {offsets = [4, 0], sizes = [1, 1], strides = [1, 1]} : vector<13x1xf32> to vector<1x1xf32>
      %c4 = arith.constant 4 : index
      %44 = arith.index_cast %1 : i32 to index
      %c0_14 = arith.constant 0 : index
      %45 = vector.load %arg11[%c4, %44, %c0_14] : memref<13x2x128xf32, #tpu.memory_space<vmem>>, vector<1x2x128xf32>
      %46 = vector.shape_cast %45 : vector<1x2x128xf32> to vector<2x128xf32>
      %47 = vector.broadcast %43 : vector<1x1xf32> to vector<2x128xf32>
      %48 = arith.mulf %47, %46 : vector<2x128xf32>
      %49 = vector.extract_strided_slice %18 {offsets = [5, 0], sizes = [1, 1], strides = [1, 1]} : vector<13x1xf32> to vector<1x1xf32>
      %c5 = arith.constant 5 : index
      %50 = arith.index_cast %1 : i32 to index
      %c0_15 = arith.constant 0 : index
      %51 = vector.load %arg11[%c5, %50, %c0_15] : memref<13x2x128xf32, #tpu.memory_space<vmem>>, vector<1x2x128xf32>
      %52 = vector.shape_cast %51 : vector<1x2x128xf32> to vector<2x128xf32>
      %53 = vector.broadcast %49 : vector<1x1xf32> to vector<2x128xf32>
      %54 = arith.mulf %53, %52 : vector<2x128xf32>
      %55 = vector.extract_strided_slice %18 {offsets = [6, 0], sizes = [1, 1], strides = [1, 1]} : vector<13x1xf32> to vector<1x1xf32>
      %c6 = arith.constant 6 : index
      %56 = arith.index_cast %1 : i32 to index
      %c0_16 = arith.constant 0 : index
      %57 = vector.load %arg11[%c6, %56, %c0_16] : memref<13x2x128xf32, #tpu.memory_space<vmem>>, vector<1x2x128xf32>
      %58 = vector.shape_cast %57 : vector<1x2x128xf32> to vector<2x128xf32>
      %59 = vector.broadcast %55 : vector<1x1xf32> to vector<2x128xf32>
      %60 = arith.mulf %59, %58 : vector<2x128xf32>
      %61 = vector.extract_strided_slice %18 {offsets = [7, 0], sizes = [1, 1], strides = [1, 1]} : vector<13x1xf32> to vector<1x1xf32>
      %c7 = arith.constant 7 : index
      %62 = arith.index_cast %1 : i32 to index
      %c0_17 = arith.constant 0 : index
      %63 = vector.load %arg11[%c7, %62, %c0_17] : memref<13x2x128xf32, #tpu.memory_space<vmem>>, vector<1x2x128xf32>
      %64 = vector.shape_cast %63 : vector<1x2x128xf32> to vector<2x128xf32>
      %65 = vector.broadcast %61 : vector<1x1xf32> to vector<2x128xf32>
      %66 = arith.mulf %65, %64 : vector<2x128xf32>
      %67 = vector.extract_strided_slice %18 {offsets = [8, 0], sizes = [1, 1], strides = [1, 1]} : vector<13x1xf32> to vector<1x1xf32>
      %c8 = arith.constant 8 : index
      %68 = arith.index_cast %1 : i32 to index
      %c0_18 = arith.constant 0 : index
      %69 = vector.load %arg11[%c8, %68, %c0_18] : memref<13x2x128xf32, #tpu.memory_space<vmem>>, vector<1x2x128xf32>
      %70 = vector.shape_cast %69 : vector<1x2x128xf32> to vector<2x128xf32>
      %71 = vector.broadcast %67 : vector<1x1xf32> to vector<2x128xf32>
      %72 = arith.mulf %71, %70 : vector<2x128xf32>
      %73 = vector.extract_strided_slice %18 {offsets = [9, 0], sizes = [1, 1], strides = [1, 1]} : vector<13x1xf32> to vector<1x1xf32>
      %c9 = arith.constant 9 : index
      %74 = arith.index_cast %1 : i32 to index
      %c0_19 = arith.constant 0 : index
      %75 = vector.load %arg11[%c9, %74, %c0_19] : memref<13x2x128xf32, #tpu.memory_space<vmem>>, vector<1x2x128xf32>
      %76 = vector.shape_cast %75 : vector<1x2x128xf32> to vector<2x128xf32>
      %77 = vector.broadcast %73 : vector<1x1xf32> to vector<2x128xf32>
      %78 = arith.mulf %77, %76 : vector<2x128xf32>
      %79 = vector.extract_strided_slice %18 {offsets = [10, 0], sizes = [1, 1], strides = [1, 1]} : vector<13x1xf32> to vector<1x1xf32>
      %c10 = arith.constant 10 : index
      %80 = arith.index_cast %1 : i32 to index
      %c0_20 = arith.constant 0 : index
      %81 = vector.load %arg11[%c10, %80, %c0_20] : memref<13x2x128xf32, #tpu.memory_space<vmem>>, vector<1x2x128xf32>
      %82 = vector.shape_cast %81 : vector<1x2x128xf32> to vector<2x128xf32>
      %83 = vector.broadcast %79 : vector<1x1xf32> to vector<2x128xf32>
      %84 = arith.mulf %83, %82 : vector<2x128xf32>
      %85 = vector.extract_strided_slice %18 {offsets = [11, 0], sizes = [1, 1], strides = [1, 1]} : vector<13x1xf32> to vector<1x1xf32>
      %c11 = arith.constant 11 : index
      %86 = arith.index_cast %1 : i32 to index
      %c0_21 = arith.constant 0 : index
      %87 = vector.load %arg11[%c11, %86, %c0_21] : memref<13x2x128xf32, #tpu.memory_space<vmem>>, vector<1x2x128xf32>
      %88 = vector.shape_cast %87 : vector<1x2x128xf32> to vector<2x128xf32>
      %89 = vector.broadcast %85 : vector<1x1xf32> to vector<2x128xf32>
      %90 = arith.mulf %89, %88 : vector<2x128xf32>
      %91 = vector.extract_strided_slice %18 {offsets = [12, 0], sizes = [1, 1], strides = [1, 1]} : vector<13x1xf32> to vector<1x1xf32>
      %c12 = arith.constant 12 : index
      %92 = arith.index_cast %1 : i32 to index
      %c0_22 = arith.constant 0 : index
      %93 = vector.load %arg11[%c12, %92, %c0_22] : memref<13x2x128xf32, #tpu.memory_space<vmem>>, vector<1x2x128xf32>
      %94 = vector.shape_cast %93 : vector<1x2x128xf32> to vector<2x128xf32>
      %95 = vector.broadcast %91 : vector<1x1xf32> to vector<2x128xf32>
      %96 = arith.mulf %95, %94 : vector<2x128xf32>
      %97 = arith.addf %24, %30 : vector<2x128xf32>
      %98 = arith.addf %36, %42 : vector<2x128xf32>
      %99 = arith.addf %48, %54 : vector<2x128xf32>
      %100 = arith.addf %60, %66 : vector<2x128xf32>
      %101 = arith.addf %72, %78 : vector<2x128xf32>
      %102 = arith.addf %84, %90 : vector<2x128xf32>
      %103 = arith.addf %97, %98 : vector<2x128xf32>
      %104 = arith.addf %99, %100 : vector<2x128xf32>
      %105 = arith.addf %101, %102 : vector<2x128xf32>
      %106 = arith.addf %103, %104 : vector<2x128xf32>
      %107 = arith.addf %105, %96 : vector<2x128xf32>
      %108 = arith.addf %106, %107 : vector<2x128xf32>
      %c0_23 = arith.constant 0 : index
      %c0_24 = arith.constant 0 : index
      %109 = vector.load %arg4[%c0_23, %c0_24] : memref<2x128xf32, #tpu.memory_space<vmem>>, vector<2x128xf32>
      %c0_25 = arith.constant 0 : index
      %c0_26 = arith.constant 0 : index
      %110 = vector.load %arg6[%c0_25, %c0_26] : memref<128x128xf32, #tpu.memory_space<vmem>>, vector<128x128xf32>
      %cst = arith.constant dense<0.000000e+00> : vector<2x128xf32>
      %111 = tpu.matmul %109, %110, %cst {dimension_numbers = #tpu.dot_dimension_numbers<[1], [0], [0], [1], [0, 0, 1, 1], [], []>} : vector<2x128xf32>, vector<128x128xf32>, vector<2x128xf32> -> vector<2x128xf32>
      %112 = arith.addf %108, %111 : vector<2x128xf32>
      %c0_27 = arith.constant 0 : index
      %c0_28 = arith.constant 0 : index
      %113 = vector.load %arg7[%c0_27, %c0_28] : memref<1x128xf32, #tpu.memory_space<vmem>>, vector<1x128xf32>
      %114 = vector.broadcast %113 : vector<1x128xf32> to vector<2x128xf32>
      %115 = arith.addf %112, %114 : vector<2x128xf32>
      %cst_29 = arith.constant dense<0xFF800000> : vector<2xf32>
      %116 = vector.multi_reduction <maximumf>, %115, %cst_29 [1] : vector<2x128xf32> to vector<2xf32>
      %117 = vector.shape_cast %116 : vector<2xf32> to vector<2x1xf32>
      %118 = vector.broadcast %117 : vector<2x1xf32> to vector<2x128xf32>
      %119 = arith.subf %115, %118 : vector<2x128xf32>
      %120 = math.exp %119 : vector<2x128xf32>
      %cst_30 = arith.constant dense<0.000000e+00> : vector<2xf32>
      %121 = vector.multi_reduction <add>, %120, %cst_30 [1] : vector<2x128xf32> to vector<2xf32>
      %122 = vector.shape_cast %121 : vector<2xf32> to vector<2x1xf32>
      %123 = math.log %122 : vector<2x1xf32>
      %124 = vector.broadcast %123 : vector<2x1xf32> to vector<2x128xf32>
      %125 = arith.subf %119, %124 : vector<2x128xf32>
      %c0_31 = arith.constant 0 : index
      %c0_32 = arith.constant 0 : index
      %126 = vector.load %arg8[%c0_31, %c0_32] : memref<2x128xf32, #tpu.memory_space<vmem>>, vector<2x128xf32>
      tpu.vector_store %arg8[%c0_31, %c0_32], %125 {strides = array<i32>} : memref<2x128xf32, #tpu.memory_space<vmem>>, vector<2x128xf32>,
    } else {
    }
    return
  }
  func.func @transform_0(%arg0: i32, %arg1: i32) -> (i32, i32) {
    %c0_i32 = arith.constant 0 : i32
    %c0_i32_0 = arith.constant 0 : i32
    %c0_i32_1 = arith.constant 0 : i32
    return %c0_i32, %c0_i32_0 : i32, i32
  }
  func.func @transform_1(%arg0: i32, %arg1: i32) -> (i32, i32, i32) {
    %c1_i32 = arith.constant 1 : i32
    %0 = arith.subi %c1_i32, %arg0 : i32
    %1 = arith.muli %arg1, %0 : i32
    %c0_i32 = arith.constant 0 : i32
    %2 = arith.muli %c0_i32, %arg0 : i32
    %3 = arith.addi %1, %2 : i32
    %c0_i32_0 = arith.constant 0 : i32
    %c0_i32_1 = arith.constant 0 : i32
    %c0_i32_2 = arith.constant 0 : i32
    return %c0_i32_0, %3, %c0_i32_1 : i32, i32, i32
  }
  func.func @transform_2(%arg0: i32, %arg1: i32) -> (i32, i32) {
    %0 = arith.muli %arg1, %arg0 : i32
    %c0_i32 = arith.constant 0 : i32
    %c0_i32_0 = arith.constant 0 : i32
    return %0, %c0_i32 : i32, i32
  }
  func.func @transform_3(%arg0: i32, %arg1: i32) -> (i32, i32) {
    %c0_i32 = arith.constant 0 : i32
    %c0_i32_0 = arith.constant 0 : i32
    %c0_i32_1 = arith.constant 0 : i32
    return %c0_i32, %c0_i32_0 : i32, i32
  }
  func.func @transform_4(%arg0: i32, %arg1: i32) -> (i32, i32) {
    %c0_i32 = arith.constant 0 : i32
    %c0_i32_0 = arith.constant 0 : i32
    %c0_i32_1 = arith.constant 0 : i32
    return %c0_i32, %c0_i32_0 : i32, i32
  }
  func.func @transform_5(%arg0: i32, %arg1: i32) -> (i32, i32) {
    %c0_i32 = arith.constant 0 : i32
    %c0_i32_0 = arith.constant 0 : i32
    %c0_i32_1 = arith.constant 0 : i32
    return %c0_i32, %c0_i32_0 : i32, i32
  }
  func.func @transform_6(%arg0: i32, %arg1: i32) -> (i32, i32) {
    %0 = arith.muli %arg1, %arg0 : i32
    %c0_i32 = arith.constant 0 : i32
    %c0_i32_0 = arith.constant 0 : i32
    return %0, %c0_i32 : i32, i32
  }
}

</mosaic_0001>

<bundles_post_ra>
// kernel: tpu_custom_call.1
= control target key start
LH: loop header
LB: loop body
LE: loop exit
PB: predicated region body
PF: predicated region fallthrough
CT: control target
= control target key end

     0   :  { %11 = vsyncpa [#allocation6], 0  ;;  %s2019_s0 = inlined_call_operand.vmem [shape: f32[13,1], index: 0, kind: input, shape index: {}]   ;;  %s2020_s1 = inlined_call_operand.hbm [shape: f32[13,2,32], index: 1, kind: input, shape index: {}]   ;;  %s2021_s2 = inlined_call_operand.vmem [shape: f32[2,128], index: 2, kind: input, shape index: {}]   ;;  %s2022_s3 = inlined_call_operand.hbm [shape: f32[32,128], index: 3, kind: input, shape index: {}]   ;;  %s2023_s4 = inlined_call_operand.hbm [shape: f32[128,128], index: 4, kind: input, shape index: {}]   ;;  %s2024_s5 = inlined_call_operand.vmem [shape: f32[1,128], index: 5, kind: input, shape index: {}]   ;;  %s2025_s6 = inlined_call_operand.hbm [shape: f32[2,128], index: 6, kind: output, shape index: {}]  }
   0x1   :  { %13 = vsyncpa [#allocation6 + $0x1], 0 }
   0x2   :  { %14 = vsyncpa [#allocation9], 0 }
   0x3   :  { %15 = vsyncpa [#allocation7], 0 }
   0x4   :  { %17 = vsyncpa [#allocation7 + $0x1], 0  ;;  %s1746_s21 = smov 0   ;;  %s1748_s22 = smov 0  }
   0x5   :  { %s1750_s23 = smov 0  }
   0x6 LB: > { %s1362_s24 = sadd.s32 4294967295, %s1700_s23   ;;  %s1363_s25 = sadd.s32 4294967294, %s1700_s23   ;;  %s1700_s23 = sphi %s1750_s23, %s23_s23   ;;  %s1696_s22 = sphi %s1748_s22, %s2029_s22   ;;  %s1692_s21 = sphi %s1746_s21, %s2028_s21  }
   0x7   : > { %s35_s26 = sadd.s32 1, %s1696_s22  ;;  %p1364_p0 = scmp.ge.s32.totalorder %s1700_s23, 1 }
   0x8   : > { %p37_p1 = scmp.ge.s32.totalorder %s35_s26, 2  ;;  %p210_p2 = scmp.lt.s32.totalorder %s1700_s23, 3 }
   0x9   : > { %p1768_p3 = scmp.eq.s32.totalorder %s1362_s24, 0  ;;  %s224_s7 = sshll.u32 %s2022_s3, 4  ;;  %s225_s7 = int_to_ptr.hbm [resolvable:$true] %s224_s7 }
   0xa   : > { %s2031_s26 = smov (%p37_p1, %s35_s26), 0  ;;  %p1774_p4 = pnand %p1364_p0, %p210_p2 }
   0xb   : > { %s1702_s8 = smov [#allocation8]   ;;  %p1367_p7 = scmp.ge.s32.totalorder %s1700_s23, 2 }
   0xc   : > { %p1479_p5 = pneg %p1774_p4  ;;  %s226_s9 = sshll.u32 %s1702_s8, 4  ;;  %s227_s9 = int_to_ptr.vmem [resolvable:$true] %s226_s9 }
   0xd   : > { %s238_s12 = sshll.u32 %s2023_s4, 4  ;;  %s1703_s13 = smov 128   ;;  %s239_s12 = int_to_ptr.hbm [resolvable:$true] %s238_s12 }
   0xe   : > { %p1480_p6 = pnand %p1768_p3, %p1479_p5  ;;  %s1704_s14 = smov 8  }
   0xf   : > { %s1705_s15 = smov [#allocation10]   ;;  %p1496_p8 = scmp.lt.s32.totalorder %s1700_s23, 2 }
  0x10   : > { %1482 = dma.hbm_to_vmem [thread:$0]  (!%p1480_p6), %s225_s7, 512, %s227_s9, [#allocation9], %s1703_s13, %s1703_s13, %s1704_s14  }
  0x11   : > { %s240_s16 = sshll.u32 %s1705_s15, 4  ;;  %p1497_p9 = scmp.eq.s32.totalorder %s1700_s23, 0  ;;  %s241_s16 = int_to_ptr.vmem [resolvable:$true] %s240_s16 }
  0x12   : > { %1485 = dma.hbm_to_vmem [thread:$0]  (!%p1480_p6), %s239_s12, 2048, %s241_s16, [#allocation9], %s1703_s13, %s1703_s13, %s1704_s14  }
  0x13   : > { %s268_s19 = sshll.u32 %s2020_s1, 4  ;;  %s1706_s20 = smov [#allocation5]   ;;  %s269_s19 = int_to_ptr.hbm [resolvable:$true] %s268_s19 }
  0x14   : > { %s270_s29 = sshll.u32 %s1706_s20, 4  ;;  %p1487_p10 = pnand %p1497_p9, %p1496_p8  ;;  %s271_s29 = int_to_ptr.vmem [resolvable:$true] %s270_s29 }
  0x15   : > { %s1707_s30 = smov 32   ;;  %s1708_s8 = smov 2  }
  0x16   : > { %1489 = dma.hbm_to_vmem [thread:$0]  (!%p1487_p10), %s269_s19, 416, %s271_s29, [#allocation6], %s1707_s30, %s1707_s30, %s1708_s8  }
  0x17   : > { %291 = sbr.rel (%p1774_p4) target bundleno = 1165 (0x48d), region = 44 }
  0x1c   : > { %1679 = dma.done.wait (%p1768_p3), [#allocation6], 416  }
  0x1d   : > { %1681 = vsyncadd (%p1768_p3), [#allocation6], 4294966880 }
  0x1e   : > { %1683 = dma.done.wait (%p1768_p3), [#allocation9], 2560  }
  0x1f   : > { %1685 = vsyncadd (%p1768_p3), [#allocation9], 4294964736  ;;  %p352_p11 = scmp.eq.s32.totalorder %s1692_s21, 0 }
  0x20   : > { %vm358_vm0 = vcmask (%p352_p11), 261120   ;;  %vm360_vm1 = vcmask (%p352_p11), 258048   ;;  %v1709_v0 = vmov (%p352_p11), 0.0  }
  0x21   : > { %357 = sbr.rel (!%p352_p11) target bundleno = 38 (0x26), region = 60  ;;  %359 = vst.msk [vmem:[#allocation2] sm:$0xff] (%p352_p11), %vm358_vm0, %v1709_v0 }
  0x22   : > { %361 = vst.msk [vmem:[#allocation2 + $0x8] sm:$0x1f] (%p352_p11), %vm360_vm1, %v1709_v0 }
  0x26 PF: > { %p1375_p12 = scmp.ne.s32.totalorder %s1692_s21, 0 }
  0x28   : > { %364 = sbr.rel (%p1375_p12) target bundleno = 209 (0xd1), region = 64 }
  0x2d   : > { %v1806_v1 = vld [vmem:[#allocation8 + $0x18] sm:$0xff]  ;;  %v1808_v2 = vld [vmem:[#allocation8 + $0x10] sm:$0xff]  ;;  %vm397_vm2 = vcmask 254976   ;;  %v365_v3 = vld [vmem:[#allocation5] sm:$0x3]  ;;  %vm370_vm3 = vcmask 261120  }
  0x2e   : > { %386 = vmatpush.msra.mxu0 %v1806_v1  ;;  %471 = vmatpush.msra.mxu2 %v1806_v1  ;;  %v1813_v4 = vld [vmem:[#allocation8 + $0x8] sm:$0xff]  ;;  %v398_v5 = vsel %vm397_vm2, %v365_v3, 0.0  ;;  %v1380_v6 = vld [vmem:[#allocation5 + $0x4] sm:$0x3]  ;;  %v1383_v9 = vld [vmem:[#allocation5 + $0x6] sm:$0x3] }
  0x2f   : > { %513 = vmatpush.msra.mxu3 %v1806_v1  ;;  %429 = vmatpush.msra.mxu1 %v1806_v1  ;;  %v399_v7 = vrot.slane %v398_v5, 4  ;;  %v483_v8 = vsel %vm397_vm2, %v1380_v6, 0.0  ;;  %v1821_v10 = vld [vmem:[#allocation8] sm:$0xff]  ;;  %v525_v12 = vsel %vm397_vm2, %v1383_v9, 0.0  ;;  %v1825_v13 = vld [vmem:[#allocation5 + $0x2] sm:$0x3] }
  0x30   : > { %387 = vmatpush.msra.mxu0 %v1808_v2  ;;  %472 = vmatpush.msra.mxu2 %v1808_v2  ;;  %v484_v11 = vrot.slane %v483_v8, 4  ;;  %v526_v15 = vrot.slane %v525_v12, 4  ;;  %v441_v16 = vsel %vm397_vm2, %v1825_v13, 0.0  ;;  %v1831_v17 = vld [vmem:[#allocation5 + $0x8] sm:$0x3]  ;;  %vm406_vm4 = vcmask 253952  }
  0x31   : > { %514 = vmatpush.msra.mxu3 %v1808_v2  ;;  %430 = vmatpush.msra.mxu1 %v1808_v2  ;;  %v400_v14 = vadd.f32 %v399_v7, %v398_v5  ;;  %v442_v19 = vrot.slane %v441_v16, 4  ;;  %v567_v20 = vsel %vm397_vm2, %v1831_v17, 0.0  ;;  %v1837_v21 = vld [vmem:[#allocation5 + $0xc] sm:$0x3]  ;;  %v1843_v26 = vld [vmem:[#allocation5 + $0xe] sm:$0x3] }
  0x32   : > { %388 = vmatpush.msra.mxu0 %v1813_v4  ;;  %473 = vmatpush.msra.mxu2 %v1813_v4  ;;  %v485_v18 = vadd.f32 %v484_v11, %v483_v8  ;;  %v527_v23 = vadd.f32 %v526_v15, %v525_v12  ;;  %v568_v24 = vrot.slane %v567_v20, 4  ;;  %v651_v25 = vsel %vm397_vm2, %v1837_v21, 0.0  ;;  %v1851_v35 = vld [vmem:[#allocation5 + $0xa] sm:$0x3]  ;;  %v396_v44 = vld [vmem:[#allocation2] sm:$0x1] }
  0x33   : > { %515 = vmatpush.msra.mxu3 %v1813_v4  ;;  %431 = vmatpush.msra.mxu1 %v1813_v4  ;;  %v401_v22 = vrot.slane %v400_v14, 2  ;;  %v443_v28 = vadd.f32 %v442_v19, %v441_v16  ;;  %v652_v29 = vrot.slane %v651_v25, 4  ;;  %v693_v30 = vsel %vm397_vm2, %v1843_v26, 0.0  ;;  %v482_v50 = vld [vmem:[#allocation2 + $0x2] sm:$0x1] }
  0x34   : > { %389 = vmatpush.msra.mxu0 %v1821_v10  ;;  %474 = vmatpush.msra.mxu2 %v1821_v10  ;;  %v486_v27 = vrot.slane %v485_v18, 2  ;;  %v528_v32 = vrot.slane %v527_v23, 2  ;;  %v569_v33 = vadd.f32 %v568_v24, %v567_v20  ;;  %v694_v34 = vrot.slane %v693_v30, 4  ;;  %v524_v55 = vld [vmem:[#allocation2 + $0x3] sm:$0x1] }
  0x35   : > { %1376 = vmatmul.msk.f32.vlgmr.msra.gmra.mxu0 %vm370_vm3, %v365_v3  ;;  %516 = vmatpush.msra.mxu3 %v1821_v10  ;;  %v402_v31 = vadd.f32 %v401_v22, %v400_v14  ;;  %v444_v37 = vrot.slane %v443_v28, 2  ;;  %v653_v38 = vadd.f32 %v652_v29, %v651_v25  ;;  %v609_v39 = vsel %vm397_vm2, %v1851_v35, 0.0  ;;  %v440_v61 = vld [vmem:[#allocation2 + $0x1] sm:$0x1]  ;;  %v566_v62 = vld [vmem:[#allocation2 + $0x4] sm:$0x1] }
  0x36   : > { %555 = vmatpush.msrb.mxu0 %v1806_v1  ;;  %1381 = vmatmul.msk.f32.vlgmr.msra.gmra.mxu2 %vm370_vm3, %v1380_v6  ;;  %v487_v36 = vadd.f32 %v486_v27, %v485_v18  ;;  %v529_v41 = vadd.f32 %v528_v32, %v527_v23  ;;  %v570_v42 = vrot.slane %v569_v33, 2  ;;  %v695_v43 = vadd.f32 %v694_v34, %v693_v30  ;;  %v650_v6 = vld [vmem:[#allocation2 + $0x6] sm:$0x1]  ;;  %v1881_v19 = vld [vmem:[#allocation5 + $0x14] sm:$0x3] }
  0x37   : > { %1384 = vmatmul.msk.f32.vlgmr.msra.gmra.mxu3 %vm370_vm3, %v1383_v9  ;;  %639 = vmatpush.msrb.mxu2 %v1806_v1  ;;  %v403_v40 = vrot.slane %v402_v31, 1  ;;  %v445_v46 = vadd.f32 %v444_v37, %v443_v28  ;;  %v654_v47 = vrot.slane %v653_v38, 2  ;;  %v610_v48 = vrot.slane %v609_v39, 4  ;;  %v1871_v9 = vld [vmem:[#allocation5 + $0x10] sm:$0x3] }
  0x38   : > { %556 = vmatpush.msrb.mxu0 %v1808_v2  ;;  %681 = vmatpush.msrb.mxu3 %v1806_v1  ;;  %v488_v45 = vrot.slane %v487_v36, 1  ;;  %v530_v51 = vrot.slane %v529_v41, 1  ;;  %v571_v52 = vadd.f32 %v570_v42, %v569_v33  ;;  %v696_v53 = vrot.slane %v695_v43, 2  ;;  %v1883_v20 = vld [vmem:[#allocation5 + $0x16] sm:$0x3] }
  0x39   : > { %640 = vmatpush.msrb.mxu2 %v1808_v2  ;;  %432 = vmatpush.msra.mxu1 %v1821_v10  ;;  %v404_v49 = vadd.f32 %v403_v40, %v402_v31  ;;  %v446_v56 = vrot.slane %v445_v46, 1  ;;  %v655_v57 = vadd.f32 %v654_v47, %v653_v38  ;;  %v611_v58 = vadd.f32 %v610_v48, %v609_v39  ;;  %v608_v24 = vld [vmem:[#allocation2 + $0x5] sm:$0x1]  ;;  %v1892_v28 = vld [vmem:[#allocation5 + $0x12] sm:$0x3] }
  0x3a   : > { %557 = vmatpush.msrb.mxu0 %v1813_v4  ;;  %682 = vmatpush.msrb.mxu3 %v1808_v2  ;;  %v489_v54 = vadd.f32 %v488_v45, %v487_v36  ;;  %v531_v60 = vadd.f32 %v530_v51, %v529_v41  ;;  %v572_v63 = vrot.slane %v571_v52, 1  ;;  %v697_v0 = vadd.f32 %v696_v53, %v695_v43  ;;  %v1904_v36 = vld [vmem:[#allocation5 + $0x18] sm:$0x3] }
  0x3b   : > { %641 = vmatpush.msrb.mxu2 %v1813_v4  ;;  %1378 = vmatmul.msk.f32.vlgmr.msra.gmra.mxu1 %vm370_vm3, %v1825_v13  ;;  %v405_v59 = vadd.f32 %v404_v49, %v396_v44  ;;  %v447_v5 = vadd.f32 %v446_v56, %v445_v46  ;;  %v656_v7 = vrot.slane %v655_v57, 1  ;;  %v612_v8 = vrot.slane %v611_v58, 2  ;;  %v692_v13 = vld [vmem:[#allocation2 + $0x7] sm:$0x1] }
  0x3c   : > { %558 = vmatpush.msrb.mxu0 %v1821_v10  ;;  %683 = vmatpush.msrb.mxu3 %v1813_v4  ;;  %v490_v3 = vadd.f32 %v489_v54, %v482_v50  ;;  %v532_v11 = vadd.f32 %v531_v60, %v524_v55  ;;  %v573_v12 = vadd.f32 %v572_v63, %v571_v52  ;;  %v698_v14 = vrot.slane %v697_v0, 1 }
  0x3d   : > { %1387 = vmatmul.msk.f32.vlgmr.msrb.gmra.mxu0 %vm370_vm3, %v1831_v17  ;;  %597 = vmatpush.msrb.mxu1 %v1806_v1  ;;  %407 = vst.msk [vmem:[#allocation2] sm:$0x1] %vm406_vm4, %v405_v59  ;;  %v735_v15 = vsel %vm397_vm2, %v1871_v9, 0.0  ;;  %v448_v16 = vadd.f32 %v447_v5, %v440_v61  ;;  %v657_v17 = vadd.f32 %v656_v7, %v655_v57  ;;  %v819_v27 = vsel %vm397_vm2, %v1881_v19, 0.0 }
  0x3e   : > { %642 = vmatpush.msrb.mxu2 %v1821_v10  ;;  %684 = vmatpush.msrb.mxu3 %v1821_v10  ;;  %491 = vst.msk [vmem:[#allocation2 + $0x2] sm:$0x1] %vm406_vm4, %v490_v3  ;;  %v613_v18 = vadd.f32 %v612_v8, %v611_v58  ;;  %v574_v22 = vadd.f32 %v573_v12, %v566_v62  ;;  %v736_v25 = vrot.slane %v735_v15, 4  ;;  %v777_v34 = vsel %vm397_vm2, %v1892_v28, 0.0  ;;  %v818_v58 = vld [vmem:[#allocation2 + $0xa] sm:$0x1] }
  0x3f   : > { %723 = vmatpush.msra.mxu0 %v1806_v1  ;;  %598 = vmatpush.msrb.mxu1 %v1808_v2  ;;  %533 = vst.msk [vmem:[#allocation2 + $0x3] sm:$0x1] %vm406_vm4, %v532_v11  ;;  %v699_v23 = vadd.f32 %v698_v14, %v697_v0  ;;  %v658_v29 = vadd.f32 %v657_v17, %v650_v6  ;;  %v778_v39 = vrot.slane %v777_v34, 4  ;;  %v903_v40 = vsel %vm397_vm2, %v1904_v36, 0.0  ;;  %v860_v62 = vld [vmem:[#allocation2 + $0xb] sm:$0x1] }
  0x40   : > { %1393 = vmatmul.msk.f32.vlgmr.msrb.gmra.mxu2 %vm370_vm3, %v1837_v21  ;;  %1396 = vmatmul.msk.f32.vlgmr.msrb.gmra.mxu3 %vm370_vm3, %v1843_v26  ;;  %449 = vst.msk [vmem:[#allocation2 + $0x1] sm:$0x1] %vm406_vm4, %v448_v16  ;;  %v614_v30 = vrot.slane %v613_v18, 1  ;;  %v820_v21 = vrot.slane %v819_v27, 4  ;;  %v861_v26 = vsel %vm397_vm2, %v1883_v20, 0.0  ;;  %v737_v32 = vadd.f32 %v736_v25, %v735_v15 }
  0x41   : > { %724 = vmatpush.msra.mxu0 %v1808_v2  ;;  %807 = vmatpush.msra.mxu2 %v1806_v1  ;;  %575 = vst.msk [vmem:[#allocation2 + $0x4] sm:$0x1] %vm406_vm4, %v574_v22  ;;  %v700_v31 = vadd.f32 %v699_v23, %v692_v13  ;;  %v862_v33 = vrot.slane %v861_v26, 4  ;;  %v904_v43 = vrot.slane %v903_v40, 4  ;;  %v779_v46 = vadd.f32 %v778_v39, %v777_v34  ;;  %v776_v3 = vld [vmem:[#allocation2 + $0x9] sm:$0x1] }
  0x42   : > { %849 = vmatpush.msra.mxu3 %v1806_v1  ;;  %599 = vmatpush.msrb.mxu1 %v1813_v4  ;;  %659 = vst.msk [vmem:[#allocation2 + $0x6] sm:$0x1] %vm406_vm4, %v658_v29  ;;  %v615_v37 = vadd.f32 %v614_v30, %v613_v18  ;;  %v821_v38 = vadd.f32 %v820_v21, %v819_v27  ;;  %v738_v41 = vrot.slane %v737_v32, 2  ;;  %v902_v8 = vld [vmem:[#allocation2 + $0xc] sm:$0x1] }
  0x43   : > { %725 = vmatpush.msra.mxu0 %v1813_v4  ;;  %808 = vmatpush.msra.mxu2 %v1808_v2  ;;  %701 = vst.msk [vmem:[#allocation2 + $0x7] sm:$0x1] %vm406_vm4, %v700_v31  ;;  %v863_v42 = vadd.f32 %v862_v33, %v861_v26  ;;  %v905_v49 = vadd.f32 %v904_v43, %v903_v40  ;;  %v780_v51 = vrot.slane %v779_v46, 2 }
  0x44   : > { %850 = vmatpush.msra.mxu3 %v1808_v2  ;;  %600 = vmatpush.msrb.mxu1 %v1821_v10  ;;  %v616_v44 = vadd.f32 %v615_v37, %v608_v24  ;;  %v822_v45 = vrot.slane %v821_v38, 2  ;;  %v739_v47 = vadd.f32 %v738_v41, %v737_v32 }
  0x45   : > { %726 = vmatpush.msra.mxu0 %v1821_v10  ;;  %809 = vmatpush.msra.mxu2 %v1813_v4  ;;  %v864_v48 = vrot.slane %v863_v42, 2  ;;  %v906_v54 = vrot.slane %v905_v49, 2  ;;  %v781_v56 = vadd.f32 %v780_v51, %v779_v46 }
  0x46   : > { %851 = vmatpush.msra.mxu3 %v1813_v4  ;;  %1390 = vmatmul.msk.f32.vlgmr.msrb.gmra.mxu1 %vm370_vm3, %v1851_v35  ;;  %617 = vst.msk [vmem:[#allocation2 + $0x5] sm:$0x1] %vm406_vm4, %v616_v44  ;;  %v823_v50 = vadd.f32 %v822_v45, %v821_v38  ;;  %v740_v52 = vrot.slane %v739_v47, 1  ;;  %v734_v35 = vld [vmem:[#allocation2 + $0x8] sm:$0x1] }
  0x47   : > { %1399 = vmatmul.msk.f32.vlgmr.msra.gmra.mxu0 %vm370_vm3, %v1871_v9  ;;  %765 = vmatpush.msra.mxu1 %v1806_v1  ;;  %v865_v53 = vadd.f32 %v864_v48, %v863_v42  ;;  %v907_v60 = vadd.f32 %v906_v54, %v905_v49 }
  0x48   : > { %810 = vmatpush.msra.mxu2 %v1821_v10  ;;  %852 = vmatpush.msra.mxu3 %v1821_v10  ;;  %v824_v55 = vrot.slane %v823_v50, 1  ;;  %v741_v57 = vadd.f32 %v740_v52, %v739_v47 }
  0x49   : > { %891 = vmatpush.msrb.mxu0 %v1806_v1  ;;  %766 = vmatpush.msra.mxu1 %v1808_v2  ;;  %v866_v59 = vrot.slane %v865_v53, 1  ;;  %v782_v1 = vrot.slane %v781_v56, 1  ;;  %v908_v5 = vrot.slane %v907_v60, 1 }
  0x4a   : > { %1405 = vmatmul.msk.f32.vlgmr.msra.gmra.mxu2 %vm370_vm3, %v1881_v19  ;;  %1408 = vmatmul.msk.f32.vlgmr.msra.gmra.mxu3 %vm370_vm3, %v1883_v20  ;;  %v825_v61 = vadd.f32 %v824_v55, %v823_v50  ;;  %v742_v63 = vadd.f32 %v741_v57, %v734_v35 }
  0x4b   : > { %892 = vmatpush.msrb.mxu0 %v1808_v2  ;;  %767 = vmatpush.msra.mxu1 %v1813_v4  ;;  %v867_v0 = vadd.f32 %v866_v59, %v865_v53  ;;  %v783_v7 = vadd.f32 %v782_v1, %v781_v56  ;;  %v909_v2 = vadd.f32 %v908_v5, %v907_v60 }
  0x4c   : > { %v826_v6 = vadd.f32 %v825_v61, %v818_v58  ;;  %743 = vst.msk [vmem:[#allocation2 + $0x8] sm:$0x1] %vm406_vm4, %v742_v63 }
  0x4d   : > { %893 = vmatpush.msrb.mxu0 %v1813_v4  ;;  %768 = vmatpush.msra.mxu1 %v1821_v10  ;;  %v868_v9 = vadd.f32 %v867_v0, %v860_v62  ;;  %v784_v11 = vadd.f32 %v783_v7, %v776_v3  ;;  %v910_v4 = vadd.f32 %v909_v2, %v902_v8 }
  0x4e   : > { %1402 = vmatmul.msk.f32.vlgmr.msra.gmra.mxu1 %vm370_vm3, %v1892_v28  ;;  %827 = vst.msk [vmem:[#allocation2 + $0xa] sm:$0x1] %vm406_vm4, %v826_v6 }
  0x4f   : > { %894 = vmatpush.msrb.mxu0 %v1821_v10  ;;  %869 = vst.msk [vmem:[#allocation2 + $0xb] sm:$0x1] %vm406_vm4, %v868_v9 }
  0x50   : > { %1411 = vmatmul.msk.f32.vlgmr.msrb.gmra.mxu0 %vm370_vm3, %v1904_v36  ;;  %785 = vst.msk [vmem:[#allocation2 + $0x9] sm:$0x1] %vm406_vm4, %v784_v11 }
  0x51   : > { %911 = vst.msk [vmem:[#allocation2 + $0xc] sm:$0x1] %vm406_vm4, %v910_v4 }
  0xb2   : > { %v391_v12 = vpop.f32.mrf.mxu0 }
  0xb3   : > { %395 = vst [vmem:[#allocation4] sm:$0x3] %v391_v12 }
  0xb8   : > { %v434_v13 = vpop.f32.mrf.mxu1 }
  0xb9   : > { %1379 = vst [vmem:[#allocation4 + $0x2] sm:$0x3] %v434_v13  ;;  %v476_v14 = vpop.f32.mrf.mxu2 }
  0xba   : > { %1382 = vst [vmem:[#allocation4 + $0x4] sm:$0x3] %v476_v14  ;;  %v518_v15 = vpop.f32.mrf.mxu3  ;;  %v560_v16 = vpop.f32.mrf.mxu0 }
  0xbb   : > { %1385 = vst [vmem:[#allocation4 + $0x6] sm:$0x3] %v518_v15 }
  0xbc   : > { %1388 = vst [vmem:[#allocation4 + $0x8] sm:$0x3] %v560_v16 }
  0xc3   : > { %v602_v10 = vpop.f32.mrf.mxu1  ;;  %v644_v17 = vpop.f32.mrf.mxu2 }
  0xc4   : > { %1391 = vst [vmem:[#allocation4 + $0xa] sm:$0x3] %v602_v10  ;;  %v686_v18 = vpop.f32.mrf.mxu3  ;;  %v728_v19 = vpop.f32.mrf.mxu0 }
  0xc5   : > { %1394 = vst [vmem:[#allocation4 + $0xc] sm:$0x3] %v644_v17 }
  0xc6   : > { %1397 = vst [vmem:[#allocation4 + $0xe] sm:$0x3] %v686_v18 }
  0xc7   : > { %1400 = vst [vmem:[#allocation4 + $0x10] sm:$0x3] %v728_v19 }
  0xcb   : > { %v770_v20 = vpop.f32.mrf.mxu1 }
  0xcc   : > { %1403 = vst [vmem:[#allocation4 + $0x12] sm:$0x3] %v770_v20 }
  0xcd   : > { %v812_v22 = vpop.f32.mrf.mxu2  ;;  %v854_v23 = vpop.f32.mrf.mxu3 }
  0xce   : > { %1406 = vst [vmem:[#allocation4 + $0x14] sm:$0x3] %v812_v22  ;;  %v896_v24 = vpop.f32.mrf.mxu0 }
  0xcf   : > { %1409 = vst [vmem:[#allocation4 + $0x16] sm:$0x3] %v854_v23 }
  0xd0   : > { %1412 = vst [vmem:[#allocation4 + $0x18] sm:$0x3] %v896_v24 }
  0xd1 PF: > { %p912_p13 = scmp.eq.s32.totalorder %s1692_s21, 1 }
  0xd2   : > { %v917_v25 = vld [vmem:[#allocation2] sm:$0xff] (%p912_p13)  ;;  %vm919_vm5 = vcmask (%p912_p13), 261120   ;;  %v918_v28 = vld [vmem:[#allocation2 + $0x8] sm:$0x1f] (%p912_p13)  ;;  %vm923_vm6 = vcmask (%p912_p13), 258048   ;;  %vm931_vm7 = vcmask (%p912_p13), 7168  }
  0xd3   : > { %916 = sbr.rel (!%p912_p13) target bundleno = 735 (0x2df), region = 68  ;;  %v920_v27 = vsel (%p912_p13), %vm919_vm5, %v917_v25, 0.0  ;;  %v924_v29 = vsel (%p912_p13), %vm923_vm6, %v918_v28, 0.0  ;;  %v927_v21 = vld [vmem:[%s2019_s0] sm:$0xff] (%p912_p13)  ;;  %v928_v26 = vld [vmem:[%s2019_s0 + $0x8] sm:$0x1f] (%p912_p13) }
  0xd4   : > { %921 = vadd.xlane.f32.xlu0 (%p912_p13), %v920_v27  ;;  %vm933_vm8 = vcmask (%p912_p13), 4096  }
  0xdc   : > { %925 = vadd.xlane.f32.xlu0 %v924_v29 }
 0x147   : > { %v922_v30 = vpop.xlane.xlu0 %921 }
 0x148   : > { %v929_v31 = vmul.f32 %v927_v21, %v922_v30 }
 0x14a   : > { %v932_v34 = vsel %vm931_vm7, %v929_v31, -inf }
 0x14f   : > { %v926_v32 = vpop.xlane.xlu0 %925 }
 0x150   : > { %v930_v33 = vmul.f32 %v928_v26, %v926_v32 }
 0x152   : > { %v934_v36 = vsel %vm933_vm8, %v930_v33, -inf }
 0x153   : > { %v935_v37 = vmax.f32 %v932_v34, %v934_v36 }
 0x155   : > { %936 = vmax.xlane.f32.xlu1 %v935_v37 }
 0x1c8   : > { %v937_v38 = vpop.xlane.xlu1 %936 }
 0x1c9   : > { %v938_v39 = vrot.slane %v937_v38, 4 }
 0x1cb   : > { %v939_v40 = vmax.f32 %v937_v38, %v938_v39 }
 0x1cd   : > { %v940_v41 = vrot.slane %v939_v40, 2 }
 0x1cf   : > { %v941_v42 = vmax.f32 %v939_v40, %v940_v41 }
 0x1d1   : > { %v942_v43 = vrot.slane %v941_v42, 1 }
 0x1d3   : > { %v943_v44 = vmax.f32 %v941_v42, %v942_v43 }
 0x1d5   : > { %1433 = vpush %v943_v44 }
 0x206   : > { %s1434_s10 = spop %1433 }
 0x207   : > { %v945_v45 = vstv %s1434_s10 }
 0x208   : > { %v946_v46 = vsub.f32 %v929_v31, %v945_v45  ;;  %v947_v47 = vsub.f32 %v930_v33, %v945_v45 }
 0x20a   : > { %v948_v48 = vmul.f32 1.442695, %v946_v46  ;;  %v950_v49 = vmul.f32 1.442695, %v947_v47 }
 0x20c   : > { %1537 = vpow2.f32 %v948_v48 }
 0x20d   : > { %1539 = vpow2.f32 %v950_v49 }
 0x212   : > { %v1538_v50 = vpop.eup %1537 }
 0x213   : > { %v1540_v51 = vpop.eup %1539  ;;  %v952_v52 = vsel %vm931_vm7, %v1538_v50, 0.0 }
 0x214   : > { %v953_v53 = vsel %vm933_vm8, %v1540_v51, 0.0 }
 0x215   : > { %v954_v54 = vadd.f32 %v953_v53, %v952_v52 }
 0x217   : > { %955 = vadd.xlane.f32.xlu1 %v954_v54 }
 0x28a   : > { %v956_v35 = vpop.xlane.xlu1 %955 }
 0x28b   : > { %v957_v55 = vrot.slane %v956_v35, 4 }
 0x28d   : > { %v958_v56 = vadd.f32 %v957_v55, %v956_v35 }
 0x28f   : > { %v959_v57 = vrot.slane %v958_v56, 2 }
 0x291   : > { %v960_v58 = vadd.f32 %v959_v57, %v958_v56 }
 0x293   : > { %v961_v59 = vrot.slane %v960_v58, 1 }
 0x295   : > { %v962_v60 = vadd.f32 %v961_v59, %v960_v58 }
 0x297   : > { %1435 = vpush %v962_v60 }
 0x2c8   : > { %s1436_s11 = spop %1435 }
 0x2c9   : > { %v964_v61 = vstv %s1436_s11 }
 0x2ca   : > { %1541 = vrcp.f32 %v964_v61  ;;  %v976_v0 = vand.u32 2147483648, %v964_v61  ;;  %v974_v5 = vand.u32 2147483647, %v964_v61  ;;  %vm970_vm10 = vweird.f32 %v964_v61 }
 0x2cc   : > { %v977_v7 = vor.u32 1.1754944e-38, %v976_v0  ;;  %vm975_vm12 = vcmp.eq.f32.partialorder %v974_v5, 8.507059e+37 }
 0x2d0   : > { %v1542_v62 = vpop.eup %1541 }
 0x2d1   : > { %v966_v1 = vmul.f32 %v1542_v62, %v964_v61  ;;  %vm971_vm9 = vweird.f32 %v1542_v62 }
 0x2d2   : > { %vm972_vm11 = vmor %vm970_vm10, %vm971_vm9 }
 0x2d3   : > { %v967_v63 = vsub.f32 1.0, %v966_v1 }
 0x2d5   : > { %v968_v3 = vmul.f32 %v1542_v62, %v967_v63 }
 0x2d7   : > { %v969_v6 = vadd.f32 %v1542_v62, %v968_v3 }
 0x2d9   : > { %v973_v8 = vsel %vm972_vm11, %v1542_v62, %v969_v6 }
 0x2da   : > { %v978_v9 = vsel %vm975_vm12, %v977_v7, %v973_v8 }
 0x2db   : > { %v979_v2 = vmul.f32 %v1538_v50, %v978_v9  ;;  %v980_v11 = vmul.f32 %v1540_v51, %v978_v9 }
 0x2dd   : > { %981 = vst.msk [vmem:[#allocation3] sm:$0xff] %vm931_vm7, %v979_v2 }
 0x2de   : > { %982 = vst.msk [vmem:[#allocation3 + $0x8] sm:$0x1f] %vm933_vm8, %v980_v11 }
 0x2df PF: > { %p1414_p0 = scmp.ne.s32.totalorder %s1692_s21, 1 }
 0x2e1   : > { %985 = sbr.rel (%p1414_p0) target bundleno = 1161 (0x489), region = 72 }
 0x2e6   : > { %v1119_v4 = vld [vmem:[#allocation10 + $0x78] sm:$0xff]  ;;  %v1118_v12 = vld [vmem:[#allocation10 + $0x70] sm:$0xff]  ;;  %v1117_v13 = vld [vmem:[#allocation10 + $0x68] sm:$0xff]  ;;  %vm1146_vm13 = vcmask 1041408  }
 0x2e7   : > { %1120 = vmatpush.msra.mxu0 %v1119_v4  ;;  %v1116_v14 = vld [vmem:[#allocation10 + $0x60] sm:$0xff]  ;;  %v1115_v16 = vld [vmem:[#allocation10 + $0x58] sm:$0xff]  ;;  %v1114_v20 = vld [vmem:[#allocation10 + $0x50] sm:$0xff] }
 0x2e8   : > { %v986_v15 = vld [vmem:[#allocation3] sm:$0xff]  ;;  %v987_v24 = vld [vmem:[#allocation3 + $0x8] sm:$0x1f]  ;;  %v1111_v21 = vld [vmem:[#allocation10 + $0x38] sm:$0xff] }
 0x2e9   : > { %1121 = vmatpush.msra.mxu0 %v1118_v12  ;;  %1437 = vpush %v986_v15  ;;  %v998_v10 = vrot.slane %v986_v15, 1  ;;  %v1006_v17 = vrot.slane %v986_v15, 2  ;;  %v1014_v18 = vrot.slane %v986_v15, 3  ;;  %v1022_v19 = vrot.slane %v986_v15, 4  ;;  %v1113_v25 = vld [vmem:[#allocation10 + $0x48] sm:$0xff]  ;;  %v1112_v28 = vld [vmem:[#allocation10 + $0x40] sm:$0xff] }
 0x2ea   : > { %v1030_v22 = vrot.slane %v986_v15, 5  ;;  %v1038_v23 = vrot.slane %v986_v15, 6  ;;  %v1046_v27 = vrot.slane %v986_v15, 7  ;;  %v1062_v29 = vrot.slane %v987_v24, 1  ;;  %v1110_v32 = vld [vmem:[#allocation10 + $0x30] sm:$0xff]  ;;  %v1109_v33 = vld [vmem:[#allocation10 + $0x28] sm:$0xff] }
 0x2eb   : > { %1122 = vmatpush.msra.mxu0 %v1117_v13  ;;  %1439 = vpush %v998_v10  ;;  %v1070_v30 = vrot.slane %v987_v24, 2  ;;  %v1078_v26 = vrot.slane %v987_v24, 3  ;;  %v1086_v31 = vrot.slane %v987_v24, 4  ;;  %v1108_v34 = vld [vmem:[#allocation10 + $0x20] sm:$0xff]  ;;  %v1107_v36 = vld [vmem:[#allocation10 + $0x18] sm:$0xff]  ;;  %v1106_v37 = vld [vmem:[#allocation10 + $0x10] sm:$0xff] }
 0x2ec   : > { %1441 = vpush %v1006_v17  ;;  %v1105_v38 = vld [vmem:[#allocation10 + $0x8] sm:$0xff]  ;;  %v1104_v39 = vld [vmem:[#allocation10] sm:$0xff]  ;;  %v1103_v40 = vld [vmem:[%s2021_s2] sm:$0x3] }
 0x2ed   : > { %1123 = vmatpush.msra.mxu0 %v1116_v14  ;;  %1443 = vpush %v1014_v18  ;;  %v989_v41 = vld [vmem:[#allocation4] sm:$0x3]  ;;  %v1415_v42 = vld [vmem:[#allocation4 + $0x2] sm:$0x3]  ;;  %v1416_v43 = vld [vmem:[#allocation4 + $0x4] sm:$0x3] }
 0x2ee   : > { %1445 = vpush %v1022_v19  ;;  %v1417_v47 = vld [vmem:[#allocation4 + $0x6] sm:$0x3]  ;;  %v1418_v49 = vld [vmem:[#allocation4 + $0x8] sm:$0x3]  ;;  %v1419_v50 = vld [vmem:[#allocation4 + $0xa] sm:$0x3] }
 0x2ef   : > { %1124 = vmatpush.msra.mxu0 %v1115_v16  ;;  %1447 = vpush %v1030_v22  ;;  %v1420_v53 = vld [vmem:[#allocation4 + $0xc] sm:$0x3]  ;;  %v1421_v35 = vld [vmem:[#allocation4 + $0xe] sm:$0x3]  ;;  %v1422_v56 = vld [vmem:[#allocation4 + $0x10] sm:$0x3] }
 0x2f0   : > { %1449 = vpush %v1038_v23  ;;  %v1423_v58 = vld [vmem:[#allocation4 + $0x12] sm:$0x3]  ;;  %v1424_v60 = vld [vmem:[#allocation4 + $0x14] sm:$0x3]  ;;  %v1425_v62 = vld [vmem:[#allocation4 + $0x16] sm:$0x3] }
 0x2f1   : > { %1125 = vmatpush.msra.mxu0 %v1114_v20  ;;  %1451 = vpush %v1046_v27  ;;  %v1426_v18 = vld [vmem:[#allocation4 + $0x18] sm:$0x3] }
 0x2f2   : > { %1453 = vpush %v987_v24 }
 0x2f3   : > { %1126 = vmatpush.msra.mxu0 %v1113_v25  ;;  %1455 = vpush %v1062_v29  ;;  %v1543_v29 = vld [vmem:[%s2024_s5] ss:$0 sm:$0xff] }
 0x2f4   : > { %1457 = vpush %v1070_v30 }
 0x2f5   : > { %1127 = vmatpush.msra.mxu0 %v1112_v28  ;;  %1459 = vpush %v1078_v26 }
 0x2f6   : > { %1461 = vpush %v1086_v31 }
 0x2f7   : > { %1128 = vmatpush.msra.mxu0 %v1111_v21 }
 0x2f9   : > { %1129 = vmatpush.msra.mxu0 %v1110_v32 }
 0x2fb   : > { %1130 = vmatpush.msra.mxu0 %v1109_v33 }
 0x2fd   : > { %1131 = vmatpush.msra.mxu0 %v1108_v34 }
 0x2ff   : > { %1132 = vmatpush.msra.mxu0 %v1107_v36 }
 0x301   : > { %1133 = vmatpush.msra.mxu0 %v1106_v37 }
 0x303   : > { %1134 = vmatpush.msra.mxu0 %v1105_v38 }
 0x305   : > { %1135 = vmatpush.msra.mxu0 %v1104_v39 }
 0x306   : > { %1136 = vmatmul.f32.vlgmr.msra.gmra.mxu0 %v1103_v40 }
 0x31a   : > { %s1962_s13 = spop %1437 }
 0x31b   : > { %v992_v44 = vstv %s1962_s13 }
 0x31c   : > { %s1964_s14 = spop %1439  ;;  %v994_v63 = vmul.f32 %v992_v44, %v989_v41 }
 0x31d   : > { %s1966_s15 = spop %1441  ;;  %v1000_v45 = vstv %s1964_s14 }
 0x31e   : > { %s1968_s16 = spop %1443  ;;  %v1008_v46 = vstv %s1966_s15  ;;  %v1002_v0 = vmul.f32 %v1415_v42, %v1000_v45 }
 0x31f   : > { %s1970_s17 = spop %1445  ;;  %v1016_v48 = vstv %s1968_s16  ;;  %v1010_v3 = vmul.f32 %v1416_v43, %v1008_v46 }
 0x320   : > { %s1972_s18 = spop %1447  ;;  %v1024_v51 = vstv %s1970_s17  ;;  %v1018_v5 = vmul.f32 %v1417_v47, %v1016_v48  ;;  %v1091_v13 = vadd.f32 %v1002_v0, %v994_v63 }
 0x321   : > { %s1974_s19 = spop %1449  ;;  %v1032_v52 = vstv %s1972_s18  ;;  %v1026_v6 = vmul.f32 %v1418_v49, %v1024_v51 }
 0x322   : > { %s1976_s20 = spop %1451  ;;  %v1040_v54 = vstv %s1974_s19  ;;  %v1034_v7 = vmul.f32 %v1419_v50, %v1032_v52  ;;  %v1092_v14 = vadd.f32 %v1018_v5, %v1010_v3 }
 0x323   : > { %s1978_s29 = spop %1453  ;;  %v1048_v55 = vstv %s1976_s20  ;;  %v1042_v8 = vmul.f32 %v1420_v53, %v1040_v54 }
 0x324   : > { %s1980_s30 = spop %1455  ;;  %v1056_v57 = vstv %s1978_s29  ;;  %v1050_v9 = vmul.f32 %v1421_v35, %v1048_v55  ;;  %v1093_v15 = vadd.f32 %v1034_v7, %v1026_v6  ;;  %v1097_v20 = vadd.f32 %v1092_v14, %v1091_v13 }
 0x325   : > { %s1982_s8 = spop %1457  ;;  %v1064_v59 = vstv %s1980_s30  ;;  %v1058_v2 = vmul.f32 %v1422_v56, %v1056_v57 }
 0x326   : > { %s1984_s27 = spop %1459  ;;  %v1072_v61 = vstv %s1982_s8  ;;  %v1066_v11 = vmul.f32 %v1423_v58, %v1064_v59  ;;  %v1094_v16 = vadd.f32 %v1050_v9, %v1042_v8 }
 0x327   : > { %v1080_v1 = vstv %s1984_s27  ;;  %v1074_v4 = vmul.f32 %v1424_v60, %v1072_v61  ;;  %s1462_s28 = spop %1461 }
 0x328   : > { %v1082_v12 = vmul.f32 %v1425_v62, %v1080_v1  ;;  %v1095_v10 = vadd.f32 %v1066_v11, %v1058_v2  ;;  %v1088_v19 = vstv %s1462_s28  ;;  %v1098_v22 = vadd.f32 %v1094_v16, %v1093_v15 }
 0x329   : > { %v1090_v23 = vmul.f32 %v1426_v18, %v1088_v19 }
 0x32a   : > { %v1096_v17 = vadd.f32 %v1082_v12, %v1074_v4  ;;  %v1100_v27 = vadd.f32 %v1098_v22, %v1097_v20 }
 0x32c   : > { %v1099_v24 = vadd.f32 %v1096_v17, %v1095_v10 }
 0x32e   : > { %v1101_v25 = vadd.f32 %v1099_v24, %v1090_v23 }
 0x330   : > { %v1102_v28 = vadd.f32 %v1101_v25, %v1100_v27 }
 0x383   : > { %v1137_v30 = vpop.f32.mrf.mxu0 }
 0x384   : > { %v1140_v21 = vadd.f32 %v1137_v30, %v1102_v28 }
 0x386   : > { %v1145_v26 = vadd.f32 %v1543_v29, %v1140_v21 }
 0x388   : > { %v1147_v31 = vsel %vm1146_vm13, %v1145_v26, -inf }
 0x389   : > { %1148 = vmax.xlane.f32.xlu0 %v1147_v31 }
 0x3fc   : > { %v1149_v32 = vpop.xlane.xlu0 %1148 }
 0x3fd   : > { %v1150_v33 = vsub.f32 %v1145_v26, %v1149_v32 }
 0x3ff   : > { %v1151_v34 = vmul.f32 1.442695, %v1150_v33 }
 0x401   : > { %1544 = vpow2.f32 %v1151_v34 }
 0x407   : > { %v1545_v36 = vpop.eup %1544 }
 0x408   : > { %v1153_v37 = vsel %vm1146_vm13, %v1545_v36, 0.0 }
 0x409   : > { %1154 = vadd.xlane.f32.xlu0 %v1153_v37 }
 0x47c   : > { %v1155_v38 = vpop.xlane.xlu0 %1154 }
 0x47d   : > { %1546 = vlog2.f32 %v1155_v38 }
 0x483   : > { %v1547_v39 = vpop.eup %1546 }
 0x484   : > { %v1157_v40 = vmul.f32 0.6931472, %v1547_v39 }
 0x486   : > { %v1158_v41 = vsub.f32 %v1150_v33, %v1157_v40 }
 0x488   : > { %1159 = vst [vmem:[#allocation11] sm:$0x3] %v1158_v41 }
 0x489 PF: > { %p1501_p1 = scmp.eq.s32.totalorder %s1362_s24, 1  ;;  %s1176_s21 = sshll.u32 %s2025_s6, 4  ;;  %s1177_s21 = int_to_ptr.hbm [resolvable:$true] %s1176_s21 }
 0x48a   : > { %s1710_s12 = smov [#allocation11]  }
 0x48b   : > { %s1174_s13 = sshll.u32 %s1710_s12, 4  ;;  %s1175_s13 = int_to_ptr.vmem [resolvable:$true] %s1174_s13 }
 0x48c   : > { %1476 = dma.vmem_to_hbm [thread:$0]  (%p1501_p1), %s1175_s13, 32, %s1177_s21, [#allocation7]  }
 0x48d PF: > { %p1503_p2 = scmp.eq.s32.totalorder %s1363_s25, 1 }
 0x48f   : > { %p1491_p3 = pnand %p1503_p2, %p1367_p7 }
 0x491   : > { %p1492_p4 = pneg %p1491_p3 }
 0x493   : > { %1687 = dma.done.wait (%p1492_p4), [#allocation7], 32  }
 0x494   : > { %1689 = vsyncadd (%p1492_p4), [#allocation7], 4294967264  ;;  %s23_s23 = sadd.s32 1, %s1700_s23   ;;  %s2028_s21 = smov %s1696_s22 }
 0x495   : > { %p20_p5 = scmp.ge.s32.totalorder %s23_s23, 4   ;;  %s2029_s22 = smov %s2031_s26 }
 0x497   :  { %22 = sbr.rel (!%p20_p5) target bundleno = 6 (0x6), region = 154 }
 0x49c   :  { %1195 = vsyncpa [#allocation6], 1 }
 0x49d   :  { %1197 = vsyncpa [#allocation6 + $0x1], 1 }
 0x49e   :  { %1198 = vsyncpa [#allocation9], 1 }
 0x49f   :  { %1199 = vsyncpa [#allocation7], 1 }
 0x4a0   :  { %1201 = vsyncpa [#allocation7 + $0x1], 1 }

</bundles_post_ra>
